<compile_context>
chip_gen: v7x
topology: tpu7x:2x2x1
jax: 0.10.0
libtpu: 0.0.40
codegen_flags: <defaults>
</compile_context>

<pallas_src>
import functools

import jax
import jax.numpy as jnp
from jax.experimental import pallas as pl
from jax.experimental.pallas import tpu as pltpu


def _round_up(x, m):
    return (x + m - 1) // m * m


def _pick_tile(m, candidates=(512, 256, 128, 64, 32, 16, 8)):
    for c in candidates:
        if m % c == 0:
            return c
    return m


# ---------------------------------------------------------------------------
# Embedding: true gather (scalar-prefetched ids + per-row DMA from HBM table)
# ---------------------------------------------------------------------------
def _embedding_gather_kernel(ids_ref, table_hbm, out_ref, buf, sem,
                             *, rows_per_block):
    base = pl.program_id(0) * rows_per_block
    # Issue all row DMAs first, then wait (overlapped gathers).
    for r in range(rows_per_block):
        tok = ids_ref[base + r]
        pltpu.make_async_copy(table_hbm.at[pl.ds(tok, 1), :],
                              buf.at[pl.ds(r, 1), :], sem.at[r]).start()
    for r in range(rows_per_block):
        tok = ids_ref[base + r]
        pltpu.make_async_copy(table_hbm.at[pl.ds(tok, 1), :],
                              buf.at[pl.ds(r, 1), :], sem.at[r]).wait()
    out_ref[...] = buf[...]


def embedding_lookup(token_ids, table, *, row_block=32):
    """token_ids: (sl, bs) int32, table: (ntoken, emb_sz) -> (sl, bs, emb_sz)."""
    sl, bs = token_ids.shape
    _, emb_sz = table.shape
    n = sl * bs
    row_block = min(row_block, _round_up(n, 8))
    n_pad = _round_up(n, row_block)
    flat = jnp.pad(token_ids.reshape(n).astype(jnp.int32), (0, n_pad - n))

    out = pl.pallas_call(
        functools.partial(_embedding_gather_kernel, rows_per_block=row_block),
        grid_spec=pltpu.PrefetchScalarGridSpec(
            num_scalar_prefetch=1,
            grid=(n_pad // row_block,),
            in_specs=[pl.BlockSpec(memory_space=pl.ANY)],     # table stays in HBM
            out_specs=pl.BlockSpec((row_block, emb_sz), lambda i, ids: (i, 0)),
            scratch_shapes=[pltpu.VMEM((row_block, emb_sz), table.dtype),
                            pltpu.SemaphoreType.DMA((row_block,))],
        ),
        out_shape=jax.ShapeDtypeStruct((n_pad, emb_sz), table.dtype),
        compiler_params=pltpu.CompilerParams(
            dimension_semantics=("parallel",),
            vmem_limit_bytes=32 * 1024 * 1024,
        ),
    )(flat, table)
    return out[:n].reshape(sl, bs, emb_sz)


# ---------------------------------------------------------------------------
# Hoisted input projection: gates_x = x @ W_ih^T + (b_ih + b_hh), one big matmul
# ---------------------------------------------------------------------------
def _input_proj_kernel(x_ref, w_ref, b_ref, out_ref):
    out_ref[...] = (jnp.dot(x_ref[...], w_ref[...],
                            preferred_element_type=jnp.float32)
                    + b_ref[...]).astype(out_ref.dtype)


# ---------------------------------------------------------------------------
# Time-chunked LSTM recurrence: only h @ W_hh stays inside the sequential loop
# ---------------------------------------------------------------------------
def _lstm_rec_kernel(gx_ref, whh_ref, y_ref, hN_ref, cN_ref, h_sc, c_sc,
                     *, out_pad, t_chunk, seq_len):
    i = pl.program_id(0)

    @pl.when(i == 0)
    def _():
        # Matches self.reset(): zero initial hidden/cell state.
        h_sc[...] = jnp.zeros_like(h_sc)
        c_sc[...] = jnp.zeros_like(c_sc)

    whh = whh_ref[...]                                # (out_pad, 4*out_pad) bf16

    def step(t, carry):
        h, c = carry                                  # f32 (bs_pad, out_pad)
        gates = gx_ref[t] + jnp.dot(h.astype(jnp.bfloat16), whh,
                                    preferred_element_type=jnp.float32)
        # PyTorch gate order: input, forget, cell(g), output. 128-aligned slices.
        i_g = jax.nn.sigmoid(gates[:, 0 * out_pad:1 * out_pad])
        f_g = jax.nn.sigmoid(gates[:, 1 * out_pad:2 * out_pad])
        g_g = jnp.tanh(gates[:, 2 * out_pad:3 * out_pad])
        o_g = jax.nn.sigmoid(gates[:, 3 * out_pad:4 * out_pad])
        c_new = f_g * c + i_g * g_g
        h_new = o_g * jnp.tanh(c_new)
        # Freeze the state on padded timesteps so the final (h, c) is exact.
        valid = (i * t_chunk + t) < seq_len
        h_new = jnp.where(valid, h_new, h)
        c_new = jnp.where(valid, c_new, c)
        y_ref[t] = h_new.astype(y_ref.dtype)
        return (h_new, c_new)

    h, c = jax.lax.fori_loop(0, t_chunk, step, (h_sc[...], c_sc[...]),
                             unroll=True)
    h_sc[...] = h
    c_sc[...] = c

    @pl.when(i == pl.num_programs(0) - 1)
    def _():
        hN_ref[...] = h
        cN_ref[...] = c


def lstm_layer(x, w_ih, w_hh, b_ih, b_hh, *, t_chunk=8):
    """x: (sl, bs, in) f32; PyTorch-layout weights:
       w_ih (4*out, in), w_hh (4*out, out), biases (4*out,)."""
    sl, bs, in_sz = x.shape
    out4 = w_ih.shape[0]
    out_sz = out4 // 4
    out_pad = _round_up(out_sz, 128)     # lane-aligned gate slices, lane-dense stores
    bs_pad = _round_up(bs, 8)            # full sublanes
    sl_pad = _round_up(sl, t_chunk)

    # Wrapper-side layout plumbing: per-gate zero-padded, lane-dense, bf16 weights.
    wih_p = jnp.transpose(w_ih.reshape(4, out_sz, in_sz), (2, 0, 1))   # (in, 4, out)
    wih_p = jnp.pad(wih_p, ((0, 0), (0, 0), (0, out_pad - out_sz)))
    wih_p = wih_p.reshape(in_sz, 4 * out_pad).astype(jnp.bfloat16)
    whh_p = jnp.transpose(w_hh.reshape(4, out_sz, out_sz), (2, 0, 1))  # (out, 4, out)
    whh_p = jnp.pad(whh_p, ((0, out_pad - out_sz), (0, 0), (0, out_pad - out_sz)))
    whh_p = whh_p.reshape(out_pad, 4 * out_pad).astype(jnp.bfloat16)
    bias = jnp.pad((b_ih + b_hh).reshape(4, out_sz), ((0, 0), (0, out_pad - out_sz)))
    bias = bias.reshape(1, 4 * out_pad).astype(jnp.float32)

    # --- Stage 1: one big lane-dense matmul for the input projection ---------
    x_p = jnp.pad(x, ((0, sl_pad - sl), (0, bs_pad - bs), (0, 0))).astype(jnp.bfloat16)
    x2d = x_p.reshape(sl_pad * bs_pad, in_sz)
    m_rows = sl_pad * bs_pad
    tm = _pick_tile(m_rows)

    gx2d = pl.pallas_call(
        _input_proj_kernel,
        grid=(m_rows // tm,),
        in_specs=[
            pl.BlockSpec((tm, in_sz), lambda i: (i, 0)),
            pl.BlockSpec((in_sz, 4 * out_pad), lambda i: (0, 0)),   # resident weights
            pl.BlockSpec((1, 4 * out_pad), lambda i: (0, 0)),
        ],
        out_specs=pl.BlockSpec((tm, 4 * out_pad), lambda i: (i, 0)),
        out_shape=jax.ShapeDtypeStruct((m_rows, 4 * out_pad), jnp.float32),
        compiler_params=pltpu.CompilerParams(
            dimension_semantics=("parallel",),
            vmem_limit_bytes=32 * 1024 * 1024,
        ),
    )(x2d, wih_p, bias)
    gx = gx2d.reshape(sl_pad, bs_pad, 4 * out_pad)

    # --- Stage 2: time-chunked recurrence ------------------------------------
    kernel = functools.partial(_lstm_rec_kernel, out_pad=out_pad,
                               t_chunk=t_chunk, seq_len=sl)
    y, h_n, c_n = pl.pallas_call(
        kernel,
        grid=(sl_pad // t_chunk,),
        in_specs=[
            pl.BlockSpec((t_chunk, bs_pad, 4 * out_pad), lambda i: (i, 0, 0)),
            pl.BlockSpec((out_pad, 4 * out_pad), lambda i: (0, 0)),  # resident W_hh
        ],
        out_specs=(
            pl.BlockSpec((t_chunk, bs_pad, out_pad), lambda i: (i, 0, 0)),
            pl.BlockSpec((bs_pad, out_pad), lambda i: (0, 0)),       # final h
            pl.BlockSpec((bs_pad, out_pad), lambda i: (0, 0)),       # final c
        ),
        out_shape=(
            jax.ShapeDtypeStruct((sl_pad, bs_pad, out_pad), jnp.float32),
            jax.ShapeDtypeStruct((bs_pad, out_pad), jnp.float32),
            jax.ShapeDtypeStruct((bs_pad, out_pad), jnp.float32),
        ),
        scratch_shapes=[
            pltpu.VMEM((bs_pad, out_pad), jnp.float32),              # h state
            pltpu.VMEM((bs_pad, out_pad), jnp.float32),              # c state
        ],
        compiler_params=pltpu.CompilerParams(
            dimension_semantics=("arbitrary",),                      # true recurrence
            vmem_limit_bytes=32 * 1024 * 1024,
        ),
    )(gx, whh_p)
    return (y[:sl, :bs, :out_sz],
            (h_n[:bs, :out_sz], c_n[:bs, :out_sz]))


# ---------------------------------------------------------------------------
# RNN_Encoder_w forward (inference)
# ---------------------------------------------------------------------------
def rnn_encoder_w_forward(token_ids, params, *, return_hidden=False):
    """token_ids: (sl, bs) int32. Returns (raw_outputs, outputs) lists."""
    emb = embedding_lookup(token_ids, params["emb"])                 # (sl, bs, emb_sz)
    raw_output = emb
    raw_outputs, outputs, new_hidden = [], [], []
    for (w_ih, w_hh, b_ih, b_hh) in params["lstm"]:
        raw_output, hc = lstm_layer(raw_output, w_ih, w_hh, b_ih, b_hh)
        new_hidden.append(hc)
        raw_outputs.append(raw_output)
        outputs.append(raw_output)            # dropouth is identity at inference
    if return_hidden:
        return raw_outputs, outputs, new_hidden
    return raw_outputs, outputs


def init_params(key, ntoken, emb_sz, n_hid, n_layers, initrange=0.1):
    keys = jax.random.split(key, 1 + 4 * n_layers)
    emb = jax.random.uniform(keys[0], (ntoken, emb_sz), jnp.float32,
                             -initrange, initrange)
    lstm = []
    in_sz = emb_sz
    for l in range(n_layers):
        out_sz = n_hid if l != n_layers - 1 else emb_sz
        k1, k2, k3, k4 = keys[1 + 4 * l: 5 + 4 * l]
        s = 1.0 / (out_sz ** 0.5)
        w_ih = jax.random.uniform(k1, (4 * out_sz, in_sz), jnp.float32, -s, s)
        w_hh = jax.random.uniform(k2, (4 * out_sz, out_sz), jnp.float32, -s, s)
        b_ih = jax.random.uniform(k3, (4 * out_sz,), jnp.float32, -s, s)
        b_hh = jax.random.uniform(k4, (4 * out_sz,), jnp.float32, -s, s)
        lstm.append((w_ih, w_hh, b_ih, b_hh))
        in_sz = out_sz
    return {"emb": emb, "lstm": lstm}


# ---------------------------------------------------------------------------
# Pure-JAX f32 reference (for sanity check; kernel uses bf16 matmul operands)
# ---------------------------------------------------------------------------
def _lstm_ref(x, w_ih, w_hh, b_ih, b_hh):
    sl, bs, _ = x.shape
    out = w_ih.shape[0] // 4
    h = jnp.zeros((bs, out), jnp.float32)
    c = jnp.zeros((bs, out), jnp.float32)
    ys = []
    for t in range(sl):
        gates = x[t] @ w_ih.T + h @ w_hh.T + b_ih + b_hh
        i, f, g, o = jnp.split(gates, 4, axis=-1)
        c = jax.nn.sigmoid(f) * c + jax.nn.sigmoid(i) * jnp.tanh(g)
        h = jax.nn.sigmoid(o) * jnp.tanh(c)
        ys.append(h)
    return jnp.stack(ys), (h, c)


if __name__ == "__main__":
    sl, bs = 10, 2                              # (sentence length, batch)
    ntoken, emb_sz, n_hid, n_layers = 50, 32, 64, 3

    key = jax.random.PRNGKey(0)
    kp, kt = jax.random.split(key)
    params = init_params(kp, ntoken, emb_sz, n_hid, n_layers)
    tokens = jax.random.randint(kt, (sl, bs), 0, ntoken, dtype=jnp.int32)

    raw_outputs, outputs, hidden = rnn_encoder_w_forward(tokens, params,
                                                         return_hidden=True)
    jax.block_until_ready((raw_outputs, outputs, hidden))

    # --- reference checks -----------------------------------------------------
    emb_k = embedding_lookup(tokens, params["emb"])
    emb_ref = params["emb"][tokens]
    assert emb_k.shape == (sl, bs, emb_sz)
    assert jnp.allclose(emb_k, emb_ref, atol=1e-6)        # DMA gather is exact

    cur = emb_ref
    for l, (w_ih, w_hh, b_ih, b_hh) in enumerate(params["lstm"]):
        y_ref, (h_ref, c_ref) = _lstm_ref(cur, w_ih, w_hh, b_ih, b_hh)
        out_sz = w_ih.shape[0] // 4
        assert raw_outputs[l].shape == (sl, bs, out_sz)
        assert outputs[l].shape == (sl, bs, out_sz)
        # bf16 matmul operands with f32 accumulation -> loose-ish tolerance.
        assert jnp.allclose(raw_outputs[l], y_ref, atol=2e-2, rtol=2e-2)
        assert jnp.allclose(outputs[l], y_ref, atol=2e-2, rtol=2e-2)
        assert jnp.allclose(hidden[l][0], h_ref, atol=2e-2, rtol=2e-2)
        assert jnp.allclose(hidden[l][1], c_ref, atol=2e-2, rtol=2e-2)
        cur = y_ref

    print("KERNEL_OK")
</pallas_src>

<mosaic_0001>
module attributes {stable_mosaic.version = 11 : i64} {
  func.func @_embedding_gather_kernel(%arg0: i32, %arg1: memref<24xi32, #tpu.memory_space<smem>>, %arg2: memref<50x32xf32, #tpu.memory_space<any>>, %arg3: memref<24x32xf32, #tpu.memory_space<vmem>>, %arg4: memref<24x32xf32, #tpu.memory_space<vmem>>, %arg5: memref<24x!tpu.dma_semaphore, #tpu.memory_space<semaphore_mem>>) attributes {dimension_semantics = [#tpu.dimension_semantics<parallel>], iteration_bounds = array<i64: 1>, scalar_prefetch = 1 : i64, scratch_operands = 2 : i64, tpu.core_type = #tpu.core_type<tc>, window_params = [{}, {transform_indices = @transform_1, window_bounds = array<i64: 24, 32>}]} {
    %c24_i32 = arith.constant 24 : i32
    %0 = arith.muli %arg0, %c24_i32 : i32
    %c0_i32 = arith.constant 0 : i32
    %1 = arith.addi %0, %c0_i32 : i32
    %2 = arith.index_cast %1 : i32 to index
    %3 = memref.load %arg1[%2] : memref<24xi32, #tpu.memory_space<smem>>
    %c0_i32_0 = arith.constant 0 : i32
    %c0_i32_1 = arith.constant 0 : i32
    %4 = tpu.memref_slice %arg2[%3, %c0_i32_1] : memref<50x32xf32, #tpu.memory_space<any>> -> memref<1x32xf32, #tpu.memory_space<any>>
    %c0_i32_2 = arith.constant 0 : i32
    %c0_i32_3 = arith.constant 0 : i32
    %5 = tpu.memref_slice %arg4[%c0_i32_2, %c0_i32_3] : memref<24x32xf32, #tpu.memory_space<vmem>> -> memref<1x32xf32, #tpu.memory_space<vmem>>
    %6 = tpu.memref_slice %arg5[%c0_i32_0] : memref<24x!tpu.dma_semaphore, #tpu.memory_space<semaphore_mem>> -> memref<1x!tpu.dma_semaphore, #tpu.memory_space<semaphore_mem>>
    %7 = tpu.memref_squeeze %6 : memref<1x!tpu.dma_semaphore, #tpu.memory_space<semaphore_mem>> -> memref<!tpu.dma_semaphore, #tpu.memory_space<semaphore_mem>>
    tpu.enqueue_dma source(%4 : memref<1x32xf32, #tpu.memory_space<any>>) target(%5 : memref<1x32xf32, #tpu.memory_space<vmem>>) target_semaphore(%7 : memref<!tpu.dma_semaphore, #tpu.memory_space<semaphore_mem>>)
    %c1_i32 = arith.constant 1 : i32
    %8 = arith.addi %0, %c1_i32 : i32
    %9 = arith.index_cast %8 : i32 to index
    %10 = memref.load %arg1[%9] : memref<24xi32, #tpu.memory_space<smem>>
    %c1_i32_4 = arith.constant 1 : i32
    %c0_i32_5 = arith.constant 0 : i32
    %11 = tpu.memref_slice %arg2[%10, %c0_i32_5] : memref<50x32xf32, #tpu.memory_space<any>> -> memref<1x32xf32, #tpu.memory_space<any>>
    %c1_i32_6 = arith.constant 1 : i32
    %c0_i32_7 = arith.constant 0 : i32
    %12 = tpu.memref_slice %arg4[%c1_i32_6, %c0_i32_7] : memref<24x32xf32, #tpu.memory_space<vmem>> -> memref<1x32xf32, #tpu.memory_space<vmem>>
    %13 = tpu.memref_slice %arg5[%c1_i32_4] : memref<24x!tpu.dma_semaphore, #tpu.memory_space<semaphore_mem>> -> memref<1x!tpu.dma_semaphore, #tpu.memory_space<semaphore_mem>>
    %14 = tpu.memref_squeeze %13 : memref<1x!tpu.dma_semaphore, #tpu.memory_space<semaphore_mem>> -> memref<!tpu.dma_semaphore, #tpu.memory_space<semaphore_mem>>
    tpu.enqueue_dma source(%11 : memref<1x32xf32, #tpu.memory_space<any>>) target(%12 : memref<1x32xf32, #tpu.memory_space<vmem>>) target_semaphore(%14 : memref<!tpu.dma_semaphore, #tpu.memory_space<semaphore_mem>>)
    %c2_i32 = arith.constant 2 : i32
    %15 = arith.addi %0, %c2_i32 : i32
    %16 = arith.index_cast %15 : i32 to index
    %17 = memref.load %arg1[%16] : memref<24xi32, #tpu.memory_space<smem>>
    %c2_i32_8 = arith.constant 2 : i32
    %c0_i32_9 = arith.constant 0 : i32
    %18 = tpu.memref_slice %arg2[%17, %c0_i32_9] : memref<50x32xf32, #tpu.memory_space<any>> -> memref<1x32xf32, #tpu.memory_space<any>>
    %c2_i32_10 = arith.constant 2 : i32
    %c0_i32_11 = arith.constant 0 : i32
    %19 = tpu.memref_slice %arg4[%c2_i32_10, %c0_i32_11] : memref<24x32xf32, #tpu.memory_space<vmem>> -> memref<1x32xf32, #tpu.memory_space<vmem>>
    %20 = tpu.memref_slice %arg5[%c2_i32_8] : memref<24x!tpu.dma_semaphore, #tpu.memory_space<semaphore_mem>> -> memref<1x!tpu.dma_semaphore, #tpu.memory_space<semaphore_mem>>
    %21 = tpu.memref_squeeze %20 : memref<1x!tpu.dma_semaphore, #tpu.memory_space<semaphore_mem>> -> memref<!tpu.dma_semaphore, #tpu.memory_space<semaphore_mem>>
    tpu.enqueue_dma source(%18 : memref<1x32xf32, #tpu.memory_space<any>>) target(%19 : memref<1x32xf32, #tpu.memory_space<vmem>>) target_semaphore(%21 : memref<!tpu.dma_semaphore, #tpu.memory_space<semaphore_mem>>)
    %c3_i32 = arith.constant 3 : i32
    %22 = arith.addi %0, %c3_i32 : i32
    %23 = arith.index_cast %22 : i32 to index
    %24 = memref.load %arg1[%23] : memref<24xi32, #tpu.memory_space<smem>>
    %c3_i32_12 = arith.constant 3 : i32
    %c0_i32_13 = arith.constant 0 : i32
    %25 = tpu.memref_slice %arg2[%24, %c0_i32_13] : memref<50x32xf32, #tpu.memory_space<any>> -> memref<1x32xf32, #tpu.memory_space<any>>
    %c3_i32_14 = arith.constant 3 : i32
    %c0_i32_15 = arith.constant 0 : i32
    %26 = tpu.memref_slice %arg4[%c3_i32_14, %c0_i32_15] : memref<24x32xf32, #tpu.memory_space<vmem>> -> memref<1x32xf32, #tpu.memory_space<vmem>>
    %27 = tpu.memref_slice %arg5[%c3_i32_12] : memref<24x!tpu.dma_semaphore, #tpu.memory_space<semaphore_mem>> -> memref<1x!tpu.dma_semaphore, #tpu.memory_space<semaphore_mem>>
    %28 = tpu.memref_squeeze %27 : memref<1x!tpu.dma_semaphore, #tpu.memory_space<semaphore_mem>> -> memref<!tpu.dma_semaphore, #tpu.memory_space<semaphore_mem>>
    tpu.enqueue_dma source(%25 : memref<1x32xf32, #tpu.memory_space<any>>) target(%26 : memref<1x32xf32, #tpu.memory_space<vmem>>) target_semaphore(%28 : memref<!tpu.dma_semaphore, #tpu.memory_space<semaphore_mem>>)
    %c4_i32 = arith.constant 4 : i32
    %29 = arith.addi %0, %c4_i32 : i32
    %30 = arith.index_cast %29 : i32 to index
    %31 = memref.load %arg1[%30] : memref<24xi32, #tpu.memory_space<smem>>
    %c4_i32_16 = arith.constant 4 : i32
    %c0_i32_17 = arith.constant 0 : i32
    %32 = tpu.memref_slice %arg2[%31, %c0_i32_17] : memref<50x32xf32, #tpu.memory_space<any>> -> memref<1x32xf32, #tpu.memory_space<any>>
    %c4_i32_18 = arith.constant 4 : i32
    %c0_i32_19 = arith.constant 0 : i32
    %33 = tpu.memref_slice %arg4[%c4_i32_18, %c0_i32_19] : memref<24x32xf32, #tpu.memory_space<vmem>> -> memref<1x32xf32, #tpu.memory_space<vmem>>
    %34 = tpu.memref_slice %arg5[%c4_i32_16] : memref<24x!tpu.dma_semaphore, #tpu.memory_space<semaphore_mem>> -> memref<1x!tpu.dma_semaphore, #tpu.memory_space<semaphore_mem>>
    %35 = tpu.memref_squeeze %34 : memref<1x!tpu.dma_semaphore, #tpu.memory_space<semaphore_mem>> -> memref<!tpu.dma_semaphore, #tpu.memory_space<semaphore_mem>>
    tpu.enqueue_dma source(%32 : memref<1x32xf32, #tpu.memory_space<any>>) target(%33 : memref<1x32xf32, #tpu.memory_space<vmem>>) target_semaphore(%35 : memref<!tpu.dma_semaphore, #tpu.memory_space<semaphore_mem>>)
    %c5_i32 = arith.constant 5 : i32
    %36 = arith.addi %0, %c5_i32 : i32
    %37 = arith.index_cast %36 : i32 to index
    %38 = memref.load %arg1[%37] : memref<24xi32, #tpu.memory_space<smem>>
    %c5_i32_20 = arith.constant 5 : i32
    %c0_i32_21 = arith.constant 0 : i32
    %39 = tpu.memref_slice %arg2[%38, %c0_i32_21] : memref<50x32xf32, #tpu.memory_space<any>> -> memref<1x32xf32, #tpu.memory_space<any>>
    %c5_i32_22 = arith.constant 5 : i32
    %c0_i32_23 = arith.constant 0 : i32
    %40 = tpu.memref_slice %arg4[%c5_i32_22, %c0_i32_23] : memref<24x32xf32, #tpu.memory_space<vmem>> -> memref<1x32xf32, #tpu.memory_space<vmem>>
    %41 = tpu.memref_slice %arg5[%c5_i32_20] : memref<24x!tpu.dma_semaphore, #tpu.memory_space<semaphore_mem>> -> memref<1x!tpu.dma_semaphore, #tpu.memory_space<semaphore_mem>>
    %42 = tpu.memref_squeeze %41 : memref<1x!tpu.dma_semaphore, #tpu.memory_space<semaphore_mem>> -> memref<!tpu.dma_semaphore, #tpu.memory_space<semaphore_mem>>
    tpu.enqueue_dma source(%39 : memref<1x32xf32, #tpu.memory_space<any>>) target(%40 : memref<1x32xf32, #tpu.memory_space<vmem>>) target_semaphore(%42 : memref<!tpu.dma_semaphore, #tpu.memory_space<semaphore_mem>>)
    %c6_i32 = arith.constant 6 : i32
    %43 = arith.addi %0, %c6_i32 : i32
    %44 = arith.index_cast %43 : i32 to index
    %45 = memref.load %arg1[%44] : memref<24xi32, #tpu.memory_space<smem>>
    %c6_i32_24 = arith.constant 6 : i32
    %c0_i32_25 = arith.constant 0 : i32
    %46 = tpu.memref_slice %arg2[%45, %c0_i32_25] : memref<50x32xf32, #tpu.memory_space<any>> -> memref<1x32xf32, #tpu.memory_space<any>>
    %c6_i32_26 = arith.constant 6 : i32
    %c0_i32_27 = arith.constant 0 : i32
    %47 = tpu.memref_slice %arg4[%c6_i32_26, %c0_i32_27] : memref<24x32xf32, #tpu.memory_space<vmem>> -> memref<1x32xf32, #tpu.memory_space<vmem>>
    %48 = tpu.memref_slice %arg5[%c6_i32_24] : memref<24x!tpu.dma_semaphore, #tpu.memory_space<semaphore_mem>> -> memref<1x!tpu.dma_semaphore, #tpu.memory_space<semaphore_mem>>
    %49 = tpu.memref_squeeze %48 : memref<1x!tpu.dma_semaphore, #tpu.memory_space<semaphore_mem>> -> memref<!tpu.dma_semaphore, #tpu.memory_space<semaphore_mem>>
    tpu.enqueue_dma source(%46 : memref<1x32xf32, #tpu.memory_space<any>>) target(%47 : memref<1x32xf32, #tpu.memory_space<vmem>>) target_semaphore(%49 : memref<!tpu.dma_semaphore, #tpu.memory_space<semaphore_mem>>)
    %c7_i32 = arith.constant 7 : i32
    %50 = arith.addi %0, %c7_i32 : i32
    %51 = arith.index_cast %50 : i32 to index
    %52 = memref.load %arg1[%51] : memref<24xi32, #tpu.memory_space<smem>>
    %c7_i32_28 = arith.constant 7 : i32
    %c0_i32_29 = arith.constant 0 : i32
    %53 = tpu.memref_slice %arg2[%52, %c0_i32_29] : memref<50x32xf32, #tpu.memory_space<any>> -> memref<1x32xf32, #tpu.memory_space<any>>
    %c7_i32_30 = arith.constant 7 : i32
    %c0_i32_31 = arith.constant 0 : i32
    %54 = tpu.memref_slice %arg4[%c7_i32_30, %c0_i32_31] : memref<24x32xf32, #tpu.memory_space<vmem>> -> memref<1x32xf32, #tpu.memory_space<vmem>>
    %55 = tpu.memref_slice %arg5[%c7_i32_28] : memref<24x!tpu.dma_semaphore, #tpu.memory_space<semaphore_mem>> -> memref<1x!tpu.dma_semaphore, #tpu.memory_space<semaphore_mem>>
    %56 = tpu.memref_squeeze %55 : memref<1x!tpu.dma_semaphore, #tpu.memory_space<semaphore_mem>> -> memref<!tpu.dma_semaphore, #tpu.memory_space<semaphore_mem>>
    tpu.enqueue_dma source(%53 : memref<1x32xf32, #tpu.memory_space<any>>) target(%54 : memref<1x32xf32, #tpu.memory_space<vmem>>) target_semaphore(%56 : memref<!tpu.dma_semaphore, #tpu.memory_space<semaphore_mem>>)
    %c8_i32 = arith.constant 8 : i32
    %57 = arith.addi %0, %c8_i32 : i32
    %58 = arith.index_cast %57 : i32 to index
    %59 = memref.load %arg1[%58] : memref<24xi32, #tpu.memory_space<smem>>
    %c8_i32_32 = arith.constant 8 : i32
    %c0_i32_33 = arith.constant 0 : i32
    %60 = tpu.memref_slice %arg2[%59, %c0_i32_33] : memref<50x32xf32, #tpu.memory_space<any>> -> memref<1x32xf32, #tpu.memory_space<any>>
    %c8_i32_34 = arith.constant 8 : i32
    %c0_i32_35 = arith.constant 0 : i32
    %61 = tpu.memref_slice %arg4[%c8_i32_34, %c0_i32_35] : memref<24x32xf32, #tpu.memory_space<vmem>> -> memref<1x32xf32, #tpu.memory_space<vmem>>
    %62 = tpu.memref_slice %arg5[%c8_i32_32] : memref<24x!tpu.dma_semaphore, #tpu.memory_space<semaphore_mem>> -> memref<1x!tpu.dma_semaphore, #tpu.memory_space<semaphore_mem>>
    %63 = tpu.memref_squeeze %62 : memref<1x!tpu.dma_semaphore, #tpu.memory_space<semaphore_mem>> -> memref<!tpu.dma_semaphore, #tpu.memory_space<semaphore_mem>>
    tpu.enqueue_dma source(%60 : memref<1x32xf32, #tpu.memory_space<any>>) target(%61 : memref<1x32xf32, #tpu.memory_space<vmem>>) target_semaphore(%63 : memref<!tpu.dma_semaphore, #tpu.memory_space<semaphore_mem>>)
    %c9_i32 = arith.constant 9 : i32
    %64 = arith.addi %0, %c9_i32 : i32
    %65 = arith.index_cast %64 : i32 to index
    %66 = memref.load %arg1[%65] : memref<24xi32, #tpu.memory_space<smem>>
    %c9_i32_36 = arith.constant 9 : i32
    %c0_i32_37 = arith.constant 0 : i32
    %67 = tpu.memref_slice %arg2[%66, %c0_i32_37] : memref<50x32xf32, #tpu.memory_space<any>> -> memref<1x32xf32, #tpu.memory_space<any>>
    %c9_i32_38 = arith.constant 9 : i32
    %c0_i32_39 = arith.constant 0 : i32
    %68 = tpu.memref_slice %arg4[%c9_i32_38, %c0_i32_39] : memref<24x32xf32, #tpu.memory_space<vmem>> -> memref<1x32xf32, #tpu.memory_space<vmem>>
    %69 = tpu.memref_slice %arg5[%c9_i32_36] : memref<24x!tpu.dma_semaphore, #tpu.memory_space<semaphore_mem>> -> memref<1x!tpu.dma_semaphore, #tpu.memory_space<semaphore_mem>>
    %70 = tpu.memref_squeeze %69 : memref<1x!tpu.dma_semaphore, #tpu.memory_space<semaphore_mem>> -> memref<!tpu.dma_semaphore, #tpu.memory_space<semaphore_mem>>
    tpu.enqueue_dma source(%67 : memref<1x32xf32, #tpu.memory_space<any>>) target(%68 : memref<1x32xf32, #tpu.memory_space<vmem>>) target_semaphore(%70 : memref<!tpu.dma_semaphore, #tpu.memory_space<semaphore_mem>>)
    %c10_i32 = arith.constant 10 : i32
    %71 = arith.addi %0, %c10_i32 : i32
    %72 = arith.index_cast %71 : i32 to index
    %73 = memref.load %arg1[%72] : memref<24xi32, #tpu.memory_space<smem>>
    %c10_i32_40 = arith.constant 10 : i32
    %c0_i32_41 = arith.constant 0 : i32
    %74 = tpu.memref_slice %arg2[%73, %c0_i32_41] : memref<50x32xf32, #tpu.memory_space<any>> -> memref<1x32xf32, #tpu.memory_space<any>>
    %c10_i32_42 = arith.constant 10 : i32
    %c0_i32_43 = arith.constant 0 : i32
    %75 = tpu.memref_slice %arg4[%c10_i32_42, %c0_i32_43] : memref<24x32xf32, #tpu.memory_space<vmem>> -> memref<1x32xf32, #tpu.memory_space<vmem>>
    %76 = tpu.memref_slice %arg5[%c10_i32_40] : memref<24x!tpu.dma_semaphore, #tpu.memory_space<semaphore_mem>> -> memref<1x!tpu.dma_semaphore, #tpu.memory_space<semaphore_mem>>
    %77 = tpu.memref_squeeze %76 : memref<1x!tpu.dma_semaphore, #tpu.memory_space<semaphore_mem>> -> memref<!tpu.dma_semaphore, #tpu.memory_space<semaphore_mem>>
    tpu.enqueue_dma source(%74 : memref<1x32xf32, #tpu.memory_space<any>>) target(%75 : memref<1x32xf32, #tpu.memory_space<vmem>>) target_semaphore(%77 : memref<!tpu.dma_semaphore, #tpu.memory_space<semaphore_mem>>)
    %c11_i32 = arith.constant 11 : i32
    %78 = arith.addi %0, %c11_i32 : i32
    %79 = arith.index_cast %78 : i32 to index
    %80 = memref.load %arg1[%79] : memref<24xi32, #tpu.memory_space<smem>>
    %c11_i32_44 = arith.constant 11 : i32
    %c0_i32_45 = arith.constant 0 : i32
    %81 = tpu.memref_slice %arg2[%80, %c0_i32_45] : memref<50x32xf32, #tpu.memory_space<any>> -> memref<1x32xf32, #tpu.memory_space<any>>
    %c11_i32_46 = arith.constant 11 : i32
    %c0_i32_47 = arith.constant 0 : i32
    %82 = tpu.memref_slice %arg4[%c11_i32_46, %c0_i32_47] : memref<24x32xf32, #tpu.memory_space<vmem>> -> memref<1x32xf32, #tpu.memory_space<vmem>>
    %83 = tpu.memref_slice %arg5[%c11_i32_44] : memref<24x!tpu.dma_semaphore, #tpu.memory_space<semaphore_mem>> -> memref<1x!tpu.dma_semaphore, #tpu.memory_space<semaphore_mem>>
    %84 = tpu.memref_squeeze %83 : memref<1x!tpu.dma_semaphore, #tpu.memory_space<semaphore_mem>> -> memref<!tpu.dma_semaphore, #tpu.memory_space<semaphore_mem>>
    tpu.enqueue_dma source(%81 : memref<1x32xf32, #tpu.memory_space<any>>) target(%82 : memref<1x32xf32, #tpu.memory_space<vmem>>) target_semaphore(%84 : memref<!tpu.dma_semaphore, #tpu.memory_space<semaphore_mem>>)
    %c12_i32 = arith.constant 12 : i32
    %85 = arith.addi %0, %c12_i32 : i32
    %86 = arith.index_cast %85 : i32 to index
    %87 = memref.load %arg1[%86] : memref<24xi32, #tpu.memory_space<smem>>
    %c12_i32_48 = arith.constant 12 : i32
    %c0_i32_49 = arith.constant 0 : i32
    %88 = tpu.memref_slice %arg2[%87, %c0_i32_49] : memref<50x32xf32, #tpu.memory_space<any>> -> memref<1x32xf32, #tpu.memory_space<any>>
    %c12_i32_50 = arith.constant 12 : i32
    %c0_i32_51 = arith.constant 0 : i32
    %89 = tpu.memref_slice %arg4[%c12_i32_50, %c0_i32_51] : memref<24x32xf32, #tpu.memory_space<vmem>> -> memref<1x32xf32, #tpu.memory_space<vmem>>
    %90 = tpu.memref_slice %arg5[%c12_i32_48] : memref<24x!tpu.dma_semaphore, #tpu.memory_space<semaphore_mem>> -> memref<1x!tpu.dma_semaphore, #tpu.memory_space<semaphore_mem>>
    %91 = tpu.memref_squeeze %90 : memref<1x!tpu.dma_semaphore, #tpu.memory_space<semaphore_mem>> -> memref<!tpu.dma_semaphore, #tpu.memory_space<semaphore_mem>>
    tpu.enqueue_dma source(%88 : memref<1x32xf32, #tpu.memory_space<any>>) target(%89 : memref<1x32xf32, #tpu.memory_space<vmem>>) target_semaphore(%91 : memref<!tpu.dma_semaphore, #tpu.memory_space<semaphore_mem>>)
    %c13_i32 = arith.constant 13 : i32
    %92 = arith.addi %0, %c13_i32 : i32
    %93 = arith.index_cast %92 : i32 to index
    %94 = memref.load %arg1[%93] : memref<24xi32, #tpu.memory_space<smem>>
    %c13_i32_52 = arith.constant 13 : i32
    %c0_i32_53 = arith.constant 0 : i32
    %95 = tpu.memref_slice %arg2[%94, %c0_i32_53] : memref<50x32xf32, #tpu.memory_space<any>> -> memref<1x32xf32, #tpu.memory_space<any>>
    %c13_i32_54 = arith.constant 13 : i32
    %c0_i32_55 = arith.constant 0 : i32
    %96 = tpu.memref_slice %arg4[%c13_i32_54, %c0_i32_55] : memref<24x32xf32, #tpu.memory_space<vmem>> -> memref<1x32xf32, #tpu.memory_space<vmem>>
    %97 = tpu.memref_slice %arg5[%c13_i32_52] : memref<24x!tpu.dma_semaphore, #tpu.memory_space<semaphore_mem>> -> memref<1x!tpu.dma_semaphore, #tpu.memory_space<semaphore_mem>>
    %98 = tpu.memref_squeeze %97 : memref<1x!tpu.dma_semaphore, #tpu.memory_space<semaphore_mem>> -> memref<!tpu.dma_semaphore, #tpu.memory_space<semaphore_mem>>
    tpu.enqueue_dma source(%95 : memref<1x32xf32, #tpu.memory_space<any>>) target(%96 : memref<1x32xf32, #tpu.memory_space<vmem>>) target_semaphore(%98 : memref<!tpu.dma_semaphore, #tpu.memory_space<semaphore_mem>>)
    %c14_i32 = arith.constant 14 : i32
    %99 = arith.addi %0, %c14_i32 : i32
    %100 = arith.index_cast %99 : i32 to index
    %101 = memref.load %arg1[%100] : memref<24xi32, #tpu.memory_space<smem>>
    %c14_i32_56 = arith.constant 14 : i32
    %c0_i32_57 = arith.constant 0 : i32
    %102 = tpu.memref_slice %arg2[%101, %c0_i32_57] : memref<50x32xf32, #tpu.memory_space<any>> -> memref<1x32xf32, #tpu.memory_space<any>>
    %c14_i32_58 = arith.constant 14 : i32
    %c0_i32_59 = arith.constant 0 : i32
    %103 = tpu.memref_slice %arg4[%c14_i32_58, %c0_i32_59] : memref<24x32xf32, #tpu.memory_space<vmem>> -> memref<1x32xf32, #tpu.memory_space<vmem>>
    %104 = tpu.memref_slice %arg5[%c14_i32_56] : memref<24x!tpu.dma_semaphore, #tpu.memory_space<semaphore_mem>> -> memref<1x!tpu.dma_semaphore, #tpu.memory_space<semaphore_mem>>
    %105 = tpu.memref_squeeze %104 : memref<1x!tpu.dma_semaphore, #tpu.memory_space<semaphore_mem>> -> memref<!tpu.dma_semaphore, #tpu.memory_space<semaphore_mem>>
    tpu.enqueue_dma source(%102 : memref<1x32xf32, #tpu.memory_space<any>>) target(%103 : memref<1x32xf32, #tpu.memory_space<vmem>>) target_semaphore(%105 : memref<!tpu.dma_semaphore, #tpu.memory_space<semaphore_mem>>)
    %c15_i32 = arith.constant 15 : i32
    %106 = arith.addi %0, %c15_i32 : i32
    %107 = arith.index_cast %106 : i32 to index
    %108 = memref.load %arg1[%107] : memref<24xi32, #tpu.memory_space<smem>>
    %c15_i32_60 = arith.constant 15 : i32
    %c0_i32_61 = arith.constant 0 : i32
    %109 = tpu.memref_slice %arg2[%108, %c0_i32_61] : memref<50x32xf32, #tpu.memory_space<any>> -> memref<1x32xf32, #tpu.memory_space<any>>
    %c15_i32_62 = arith.constant 15 : i32
    %c0_i32_63 = arith.constant 0 : i32
    %110 = tpu.memref_slice %arg4[%c15_i32_62, %c0_i32_63] : memref<24x32xf32, #tpu.memory_space<vmem>> -> memref<1x32xf32, #tpu.memory_space<vmem>>
    %111 = tpu.memref_slice %arg5[%c15_i32_60] : memref<24x!tpu.dma_semaphore, #tpu.memory_space<semaphore_mem>> -> memref<1x!tpu.dma_semaphore, #tpu.memory_space<semaphore_mem>>
    %112 = tpu.memref_squeeze %111 : memref<1x!tpu.dma_semaphore, #tpu.memory_space<semaphore_mem>> -> memref<!tpu.dma_semaphore, #tpu.memory_space<semaphore_mem>>
    tpu.enqueue_dma source(%109 : memref<1x32xf32, #tpu.memory_space<any>>) target(%110 : memref<1x32xf32, #tpu.memory_space<vmem>>) target_semaphore(%112 : memref<!tpu.dma_semaphore, #tpu.memory_space<semaphore_mem>>)
    %c16_i32 = arith.constant 16 : i32
    %113 = arith.addi %0, %c16_i32 : i32
    %114 = arith.index_cast %113 : i32 to index
    %115 = memref.load %arg1[%114] : memref<24xi32, #tpu.memory_space<smem>>
    %c16_i32_64 = arith.constant 16 : i32
    %c0_i32_65 = arith.constant 0 : i32
    %116 = tpu.memref_slice %arg2[%115, %c0_i32_65] : memref<50x32xf32, #tpu.memory_space<any>> -> memref<1x32xf32, #tpu.memory_space<any>>
    %c16_i32_66 = arith.constant 16 : i32
    %c0_i32_67 = arith.constant 0 : i32
    %117 = tpu.memref_slice %arg4[%c16_i32_66, %c0_i32_67] : memref<24x32xf32, #tpu.memory_space<vmem>> -> memref<1x32xf32, #tpu.memory_space<vmem>>
    %118 = tpu.memref_slice %arg5[%c16_i32_64] : memref<24x!tpu.dma_semaphore, #tpu.memory_space<semaphore_mem>> -> memref<1x!tpu.dma_semaphore, #tpu.memory_space<semaphore_mem>>
    %119 = tpu.memref_squeeze %118 : memref<1x!tpu.dma_semaphore, #tpu.memory_space<semaphore_mem>> -> memref<!tpu.dma_semaphore, #tpu.memory_space<semaphore_mem>>
    tpu.enqueue_dma source(%116 : memref<1x32xf32, #tpu.memory_space<any>>) target(%117 : memref<1x32xf32, #tpu.memory_space<vmem>>) target_semaphore(%119 : memref<!tpu.dma_semaphore, #tpu.memory_space<semaphore_mem>>)
    %c17_i32 = arith.constant 17 : i32
    %120 = arith.addi %0, %c17_i32 : i32
    %121 = arith.index_cast %120 : i32 to index
    %122 = memref.load %arg1[%121] : memref<24xi32, #tpu.memory_space<smem>>
    %c17_i32_68 = arith.constant 17 : i32
    %c0_i32_69 = arith.constant 0 : i32
    %123 = tpu.memref_slice %arg2[%122, %c0_i32_69] : memref<50x32xf32, #tpu.memory_space<any>> -> memref<1x32xf32, #tpu.memory_space<any>>
    %c17_i32_70 = arith.constant 17 : i32
    %c0_i32_71 = arith.constant 0 : i32
    %124 = tpu.memref_slice %arg4[%c17_i32_70, %c0_i32_71] : memref<24x32xf32, #tpu.memory_space<vmem>> -> memref<1x32xf32, #tpu.memory_space<vmem>>
    %125 = tpu.memref_slice %arg5[%c17_i32_68] : memref<24x!tpu.dma_semaphore, #tpu.memory_space<semaphore_mem>> -> memref<1x!tpu.dma_semaphore, #tpu.memory_space<semaphore_mem>>
    %126 = tpu.memref_squeeze %125 : memref<1x!tpu.dma_semaphore, #tpu.memory_space<semaphore_mem>> -> memref<!tpu.dma_semaphore, #tpu.memory_space<semaphore_mem>>
    tpu.enqueue_dma source(%123 : memref<1x32xf32, #tpu.memory_space<any>>) target(%124 : memref<1x32xf32, #tpu.memory_space<vmem>>) target_semaphore(%126 : memref<!tpu.dma_semaphore, #tpu.memory_space<semaphore_mem>>)
    %c18_i32 = arith.constant 18 : i32
    %127 = arith.addi %0, %c18_i32 : i32
    %128 = arith.index_cast %127 : i32 to index
    %129 = memref.load %arg1[%128] : memref<24xi32, #tpu.memory_space<smem>>
    %c18_i32_72 = arith.constant 18 : i32
    %c0_i32_73 = arith.constant 0 : i32
    %130 = tpu.memref_slice %arg2[%129, %c0_i32_73] : memref<50x32xf32, #tpu.memory_space<any>> -> memref<1x32xf32, #tpu.memory_space<any>>
    %c18_i32_74 = arith.constant 18 : i32
    %c0_i32_75 = arith.constant 0 : i32
    %131 = tpu.memref_slice %arg4[%c18_i32_74, %c0_i32_75] : memref<24x32xf32, #tpu.memory_space<vmem>> -> memref<1x32xf32, #tpu.memory_space<vmem>>
    %132 = tpu.memref_slice %arg5[%c18_i32_72] : memref<24x!tpu.dma_semaphore, #tpu.memory_space<semaphore_mem>> -> memref<1x!tpu.dma_semaphore, #tpu.memory_space<semaphore_mem>>
    %133 = tpu.memref_squeeze %132 : memref<1x!tpu.dma_semaphore, #tpu.memory_space<semaphore_mem>> -> memref<!tpu.dma_semaphore, #tpu.memory_space<semaphore_mem>>
    tpu.enqueue_dma source(%130 : memref<1x32xf32, #tpu.memory_space<any>>) target(%131 : memref<1x32xf32, #tpu.memory_space<vmem>>) target_semaphore(%133 : memref<!tpu.dma_semaphore, #tpu.memory_space<semaphore_mem>>)
    %c19_i32 = arith.constant 19 : i32
    %134 = arith.addi %0, %c19_i32 : i32
    %135 = arith.index_cast %134 : i32 to index
    %136 = memref.load %arg1[%135] : memref<24xi32, #tpu.memory_space<smem>>
    %c19_i32_76 = arith.constant 19 : i32
    %c0_i32_77 = arith.constant 0 : i32
    %137 = tpu.memref_slice %arg2[%136, %c0_i32_77] : memref<50x32xf32, #tpu.memory_space<any>> -> memref<1x32xf32, #tpu.memory_space<any>>
    %c19_i32_78 = arith.constant 19 : i32
    %c0_i32_79 = arith.constant 0 : i32
    %138 = tpu.memref_slice %arg4[%c19_i32_78, %c0_i32_79] : memref<24x32xf32, #tpu.memory_space<vmem>> -> memref<1x32xf32, #tpu.memory_space<vmem>>
    %139 = tpu.memref_slice %arg5[%c19_i32_76] : memref<24x!tpu.dma_semaphore, #tpu.memory_space<semaphore_mem>> -> memref<1x!tpu.dma_semaphore, #tpu.memory_space<semaphore_mem>>
    %140 = tpu.memref_squeeze %139 : memref<1x!tpu.dma_semaphore, #tpu.memory_space<semaphore_mem>> -> memref<!tpu.dma_semaphore, #tpu.memory_space<semaphore_mem>>
    tpu.enqueue_dma source(%137 : memref<1x32xf32, #tpu.memory_space<any>>) target(%138 : memref<1x32xf32, #tpu.memory_space<vmem>>) target_semaphore(%140 : memref<!tpu.dma_semaphore, #tpu.memory_space<semaphore_mem>>)
    %c20_i32 = arith.constant 20 : i32
    %141 = arith.addi %0, %c20_i32 : i32
    %142 = arith.index_cast %141 : i32 to index
    %143 = memref.load %arg1[%142] : memref<24xi32, #tpu.memory_space<smem>>
    %c20_i32_80 = arith.constant 20 : i32
    %c0_i32_81 = arith.constant 0 : i32
    %144 = tpu.memref_slice %arg2[%143, %c0_i32_81] : memref<50x32xf32, #tpu.memory_space<any>> -> memref<1x32xf32, #tpu.memory_space<any>>
    %c20_i32_82 = arith.constant 20 : i32
    %c0_i32_83 = arith.constant 0 : i32
    %145 = tpu.memref_slice %arg4[%c20_i32_82, %c0_i32_83] : memref<24x32xf32, #tpu.memory_space<vmem>> -> memref<1x32xf32, #tpu.memory_space<vmem>>
    %146 = tpu.memref_slice %arg5[%c20_i32_80] : memref<24x!tpu.dma_semaphore, #tpu.memory_space<semaphore_mem>> -> memref<1x!tpu.dma_semaphore, #tpu.memory_space<semaphore_mem>>
    %147 = tpu.memref_squeeze %146 : memref<1x!tpu.dma_semaphore, #tpu.memory_space<semaphore_mem>> -> memref<!tpu.dma_semaphore, #tpu.memory_space<semaphore_mem>>
    tpu.enqueue_dma source(%144 : memref<1x32xf32, #tpu.memory_space<any>>) target(%145 : memref<1x32xf32, #tpu.memory_space<vmem>>) target_semaphore(%147 : memref<!tpu.dma_semaphore, #tpu.memory_space<semaphore_mem>>)
    %c21_i32 = arith.constant 21 : i32
    %148 = arith.addi %0, %c21_i32 : i32
    %149 = arith.index_cast %148 : i32 to index
    %150 = memref.load %arg1[%149] : memref<24xi32, #tpu.memory_space<smem>>
    %c21_i32_84 = arith.constant 21 : i32
    %c0_i32_85 = arith.constant 0 : i32
    %151 = tpu.memref_slice %arg2[%150, %c0_i32_85] : memref<50x32xf32, #tpu.memory_space<any>> -> memref<1x32xf32, #tpu.memory_space<any>>
    %c21_i32_86 = arith.constant 21 : i32
    %c0_i32_87 = arith.constant 0 : i32
    %152 = tpu.memref_slice %arg4[%c21_i32_86, %c0_i32_87] : memref<24x32xf32, #tpu.memory_space<vmem>> -> memref<1x32xf32, #tpu.memory_space<vmem>>
    %153 = tpu.memref_slice %arg5[%c21_i32_84] : memref<24x!tpu.dma_semaphore, #tpu.memory_space<semaphore_mem>> -> memref<1x!tpu.dma_semaphore, #tpu.memory_space<semaphore_mem>>
    %154 = tpu.memref_squeeze %153 : memref<1x!tpu.dma_semaphore, #tpu.memory_space<semaphore_mem>> -> memref<!tpu.dma_semaphore, #tpu.memory_space<semaphore_mem>>
    tpu.enqueue_dma source(%151 : memref<1x32xf32, #tpu.memory_space<any>>) target(%152 : memref<1x32xf32, #tpu.memory_space<vmem>>) target_semaphore(%154 : memref<!tpu.dma_semaphore, #tpu.memory_space<semaphore_mem>>)
    %c22_i32 = arith.constant 22 : i32
    %155 = arith.addi %0, %c22_i32 : i32
    %156 = arith.index_cast %155 : i32 to index
    %157 = memref.load %arg1[%156] : memref<24xi32, #tpu.memory_space<smem>>
    %c22_i32_88 = arith.constant 22 : i32
    %c0_i32_89 = arith.constant 0 : i32
    %158 = tpu.memref_slice %arg2[%157, %c0_i32_89] : memref<50x32xf32, #tpu.memory_space<any>> -> memref<1x32xf32, #tpu.memory_space<any>>
    %c22_i32_90 = arith.constant 22 : i32
    %c0_i32_91 = arith.constant 0 : i32
    %159 = tpu.memref_slice %arg4[%c22_i32_90, %c0_i32_91] : memref<24x32xf32, #tpu.memory_space<vmem>> -> memref<1x32xf32, #tpu.memory_space<vmem>>
    %160 = tpu.memref_slice %arg5[%c22_i32_88] : memref<24x!tpu.dma_semaphore, #tpu.memory_space<semaphore_mem>> -> memref<1x!tpu.dma_semaphore, #tpu.memory_space<semaphore_mem>>
    %161 = tpu.memref_squeeze %160 : memref<1x!tpu.dma_semaphore, #tpu.memory_space<semaphore_mem>> -> memref<!tpu.dma_semaphore, #tpu.memory_space<semaphore_mem>>
    tpu.enqueue_dma source(%158 : memref<1x32xf32, #tpu.memory_space<any>>) target(%159 : memref<1x32xf32, #tpu.memory_space<vmem>>) target_semaphore(%161 : memref<!tpu.dma_semaphore, #tpu.memory_space<semaphore_mem>>)
    %c23_i32 = arith.constant 23 : i32
    %162 = arith.addi %0, %c23_i32 : i32
    %163 = arith.index_cast %162 : i32 to index
    %164 = memref.load %arg1[%163] : memref<24xi32, #tpu.memory_space<smem>>
    %c23_i32_92 = arith.constant 23 : i32
    %c0_i32_93 = arith.constant 0 : i32
    %165 = tpu.memref_slice %arg2[%164, %c0_i32_93] : memref<50x32xf32, #tpu.memory_space<any>> -> memref<1x32xf32, #tpu.memory_space<any>>
    %c23_i32_94 = arith.constant 23 : i32
    %c0_i32_95 = arith.constant 0 : i32
    %166 = tpu.memref_slice %arg4[%c23_i32_94, %c0_i32_95] : memref<24x32xf32, #tpu.memory_space<vmem>> -> memref<1x32xf32, #tpu.memory_space<vmem>>
    %167 = tpu.memref_slice %arg5[%c23_i32_92] : memref<24x!tpu.dma_semaphore, #tpu.memory_space<semaphore_mem>> -> memref<1x!tpu.dma_semaphore, #tpu.memory_space<semaphore_mem>>
    %168 = tpu.memref_squeeze %167 : memref<1x!tpu.dma_semaphore, #tpu.memory_space<semaphore_mem>> -> memref<!tpu.dma_semaphore, #tpu.memory_space<semaphore_mem>>
    tpu.enqueue_dma source(%165 : memref<1x32xf32, #tpu.memory_space<any>>) target(%166 : memref<1x32xf32, #tpu.memory_space<vmem>>) target_semaphore(%168 : memref<!tpu.dma_semaphore, #tpu.memory_space<semaphore_mem>>)
    %c0_i32_96 = arith.constant 0 : i32
    %169 = arith.addi %0, %c0_i32_96 : i32
    %170 = arith.index_cast %169 : i32 to index
    %171 = memref.load %arg1[%170] : memref<24xi32, #tpu.memory_space<smem>>
    %c0_i32_97 = arith.constant 0 : i32
    %c0_i32_98 = arith.constant 0 : i32
    %172 = tpu.memref_slice %arg2[%171, %c0_i32_98] : memref<50x32xf32, #tpu.memory_space<any>> -> memref<1x32xf32, #tpu.memory_space<any>>
    %c0_i32_99 = arith.constant 0 : i32
    %c0_i32_100 = arith.constant 0 : i32
    %173 = tpu.memref_slice %arg4[%c0_i32_99, %c0_i32_100] : memref<24x32xf32, #tpu.memory_space<vmem>> -> memref<1x32xf32, #tpu.memory_space<vmem>>
    %174 = tpu.memref_slice %arg5[%c0_i32_97] : memref<24x!tpu.dma_semaphore, #tpu.memory_space<semaphore_mem>> -> memref<1x!tpu.dma_semaphore, #tpu.memory_space<semaphore_mem>>
    %175 = tpu.memref_squeeze %174 : memref<1x!tpu.dma_semaphore, #tpu.memory_space<semaphore_mem>> -> memref<!tpu.dma_semaphore, #tpu.memory_space<semaphore_mem>>
    tpu.wait_dma2 semaphore(%175 : memref<!tpu.dma_semaphore, #tpu.memory_space<semaphore_mem>>) src(%172 : memref<1x32xf32, #tpu.memory_space<any>>) dst(%173 : memref<1x32xf32, #tpu.memory_space<vmem>>)
    %c1_i32_101 = arith.constant 1 : i32
    %176 = arith.addi %0, %c1_i32_101 : i32
    %177 = arith.index_cast %176 : i32 to index
    %178 = memref.load %arg1[%177] : memref<24xi32, #tpu.memory_space<smem>>
    %c1_i32_102 = arith.constant 1 : i32
    %c0_i32_103 = arith.constant 0 : i32
    %179 = tpu.memref_slice %arg2[%178, %c0_i32_103] : memref<50x32xf32, #tpu.memory_space<any>> -> memref<1x32xf32, #tpu.memory_space<any>>
    %c1_i32_104 = arith.constant 1 : i32
    %c0_i32_105 = arith.constant 0 : i32
    %180 = tpu.memref_slice %arg4[%c1_i32_104, %c0_i32_105] : memref<24x32xf32, #tpu.memory_space<vmem>> -> memref<1x32xf32, #tpu.memory_space<vmem>>
    %181 = tpu.memref_slice %arg5[%c1_i32_102] : memref<24x!tpu.dma_semaphore, #tpu.memory_space<semaphore_mem>> -> memref<1x!tpu.dma_semaphore, #tpu.memory_space<semaphore_mem>>
    %182 = tpu.memref_squeeze %181 : memref<1x!tpu.dma_semaphore, #tpu.memory_space<semaphore_mem>> -> memref<!tpu.dma_semaphore, #tpu.memory_space<semaphore_mem>>
    tpu.wait_dma2 semaphore(%182 : memref<!tpu.dma_semaphore, #tpu.memory_space<semaphore_mem>>) src(%179 : memref<1x32xf32, #tpu.memory_space<any>>) dst(%180 : memref<1x32xf32, #tpu.memory_space<vmem>>)
    %c2_i32_106 = arith.constant 2 : i32
    %183 = arith.addi %0, %c2_i32_106 : i32
    %184 = arith.index_cast %183 : i32 to index
    %185 = memref.load %arg1[%184] : memref<24xi32, #tpu.memory_space<smem>>
    %c2_i32_107 = arith.constant 2 : i32
    %c0_i32_108 = arith.constant 0 : i32
    %186 = tpu.memref_slice %arg2[%185, %c0_i32_108] : memref<50x32xf32, #tpu.memory_space<any>> -> memref<1x32xf32, #tpu.memory_space<any>>
    %c2_i32_109 = arith.constant 2 : i32
    %c0_i32_110 = arith.constant 0 : i32
    %187 = tpu.memref_slice %arg4[%c2_i32_109, %c0_i32_110] : memref<24x32xf32, #tpu.memory_space<vmem>> -> memref<1x32xf32, #tpu.memory_space<vmem>>
    %188 = tpu.memref_slice %arg5[%c2_i32_107] : memref<24x!tpu.dma_semaphore, #tpu.memory_space<semaphore_mem>> -> memref<1x!tpu.dma_semaphore, #tpu.memory_space<semaphore_mem>>
    %189 = tpu.memref_squeeze %188 : memref<1x!tpu.dma_semaphore, #tpu.memory_space<semaphore_mem>> -> memref<!tpu.dma_semaphore, #tpu.memory_space<semaphore_mem>>
    tpu.wait_dma2 semaphore(%189 : memref<!tpu.dma_semaphore, #tpu.memory_space<semaphore_mem>>) src(%186 : memref<1x32xf32, #tpu.memory_space<any>>) dst(%187 : memref<1x32xf32, #tpu.memory_space<vmem>>)
    %c3_i32_111 = arith.constant 3 : i32
    %190 = arith.addi %0, %c3_i32_111 : i32
    %191 = arith.index_cast %190 : i32 to index
    %192 = memref.load %arg1[%191] : memref<24xi32, #tpu.memory_space<smem>>
    %c3_i32_112 = arith.constant 3 : i32
    %c0_i32_113 = arith.constant 0 : i32
    %193 = tpu.memref_slice %arg2[%192, %c0_i32_113] : memref<50x32xf32, #tpu.memory_space<any>> -> memref<1x32xf32, #tpu.memory_space<any>>
    %c3_i32_114 = arith.constant 3 : i32
    %c0_i32_115 = arith.constant 0 : i32
    %194 = tpu.memref_slice %arg4[%c3_i32_114, %c0_i32_115] : memref<24x32xf32, #tpu.memory_space<vmem>> -> memref<1x32xf32, #tpu.memory_space<vmem>>
    %195 = tpu.memref_slice %arg5[%c3_i32_112] : memref<24x!tpu.dma_semaphore, #tpu.memory_space<semaphore_mem>> -> memref<1x!tpu.dma_semaphore, #tpu.memory_space<semaphore_mem>>
    %196 = tpu.memref_squeeze %195 : memref<1x!tpu.dma_semaphore, #tpu.memory_space<semaphore_mem>> -> memref<!tpu.dma_semaphore, #tpu.memory_space<semaphore_mem>>
    tpu.wait_dma2 semaphore(%196 : memref<!tpu.dma_semaphore, #tpu.memory_space<semaphore_mem>>) src(%193 : memref<1x32xf32, #tpu.memory_space<any>>) dst(%194 : memref<1x32xf32, #tpu.memory_space<vmem>>)
    %c4_i32_116 = arith.constant 4 : i32
    %197 = arith.addi %0, %c4_i32_116 : i32
    %198 = arith.index_cast %197 : i32 to index
    %199 = memref.load %arg1[%198] : memref<24xi32, #tpu.memory_space<smem>>
    %c4_i32_117 = arith.constant 4 : i32
    %c0_i32_118 = arith.constant 0 : i32
    %200 = tpu.memref_slice %arg2[%199, %c0_i32_118] : memref<50x32xf32, #tpu.memory_space<any>> -> memref<1x32xf32, #tpu.memory_space<any>>
    %c4_i32_119 = arith.constant 4 : i32
    %c0_i32_120 = arith.constant 0 : i32
    %201 = tpu.memref_slice %arg4[%c4_i32_119, %c0_i32_120] : memref<24x32xf32, #tpu.memory_space<vmem>> -> memref<1x32xf32, #tpu.memory_space<vmem>>
    %202 = tpu.memref_slice %arg5[%c4_i32_117] : memref<24x!tpu.dma_semaphore, #tpu.memory_space<semaphore_mem>> -> memref<1x!tpu.dma_semaphore, #tpu.memory_space<semaphore_mem>>
    %203 = tpu.memref_squeeze %202 : memref<1x!tpu.dma_semaphore, #tpu.memory_space<semaphore_mem>> -> memref<!tpu.dma_semaphore, #tpu.memory_space<semaphore_mem>>
    tpu.wait_dma2 semaphore(%203 : memref<!tpu.dma_semaphore, #tpu.memory_space<semaphore_mem>>) src(%200 : memref<1x32xf32, #tpu.memory_space<any>>) dst(%201 : memref<1x32xf32, #tpu.memory_space<vmem>>)
    %c5_i32_121 = arith.constant 5 : i32
    %204 = arith.addi %0, %c5_i32_121 : i32
    %205 = arith.index_cast %204 : i32 to index
    %206 = memref.load %arg1[%205] : memref<24xi32, #tpu.memory_space<smem>>
    %c5_i32_122 = arith.constant 5 : i32
    %c0_i32_123 = arith.constant 0 : i32
    %207 = tpu.memref_slice %arg2[%206, %c0_i32_123] : memref<50x32xf32, #tpu.memory_space<any>> -> memref<1x32xf32, #tpu.memory_space<any>>
    %c5_i32_124 = arith.constant 5 : i32
    %c0_i32_125 = arith.constant 0 : i32
    %208 = tpu.memref_slice %arg4[%c5_i32_124, %c0_i32_125] : memref<24x32xf32, #tpu.memory_space<vmem>> -> memref<1x32xf32, #tpu.memory_space<vmem>>
    %209 = tpu.memref_slice %arg5[%c5_i32_122] : memref<24x!tpu.dma_semaphore, #tpu.memory_space<semaphore_mem>> -> memref<1x!tpu.dma_semaphore, #tpu.memory_space<semaphore_mem>>
    %210 = tpu.memref_squeeze %209 : memref<1x!tpu.dma_semaphore, #tpu.memory_space<semaphore_mem>> -> memref<!tpu.dma_semaphore, #tpu.memory_space<semaphore_mem>>
    tpu.wait_dma2 semaphore(%210 : memref<!tpu.dma_semaphore, #tpu.memory_space<semaphore_mem>>) src(%207 : memref<1x32xf32, #tpu.memory_space<any>>) dst(%208 : memref<1x32xf32, #tpu.memory_space<vmem>>)
    %c6_i32_126 = arith.constant 6 : i32
    %211 = arith.addi %0, %c6_i32_126 : i32
    %212 = arith.index_cast %211 : i32 to index
    %213 = memref.load %arg1[%212] : memref<24xi32, #tpu.memory_space<smem>>
    %c6_i32_127 = arith.constant 6 : i32
    %c0_i32_128 = arith.constant 0 : i32
    %214 = tpu.memref_slice %arg2[%213, %c0_i32_128] : memref<50x32xf32, #tpu.memory_space<any>> -> memref<1x32xf32, #tpu.memory_space<any>>
    %c6_i32_129 = arith.constant 6 : i32
    %c0_i32_130 = arith.constant 0 : i32
    %215 = tpu.memref_slice %arg4[%c6_i32_129, %c0_i32_130] : memref<24x32xf32, #tpu.memory_space<vmem>> -> memref<1x32xf32, #tpu.memory_space<vmem>>
    %216 = tpu.memref_slice %arg5[%c6_i32_127] : memref<24x!tpu.dma_semaphore, #tpu.memory_space<semaphore_mem>> -> memref<1x!tpu.dma_semaphore, #tpu.memory_space<semaphore_mem>>
    %217 = tpu.memref_squeeze %216 : memref<1x!tpu.dma_semaphore, #tpu.memory_space<semaphore_mem>> -> memref<!tpu.dma_semaphore, #tpu.memory_space<semaphore_mem>>
    tpu.wait_dma2 semaphore(%217 : memref<!tpu.dma_semaphore, #tpu.memory_space<semaphore_mem>>) src(%214 : memref<1x32xf32, #tpu.memory_space<any>>) dst(%215 : memref<1x32xf32, #tpu.memory_space<vmem>>)
    %c7_i32_131 = arith.constant 7 : i32
    %218 = arith.addi %0, %c7_i32_131 : i32
    %219 = arith.index_cast %218 : i32 to index
    %220 = memref.load %arg1[%219] : memref<24xi32, #tpu.memory_space<smem>>
    %c7_i32_132 = arith.constant 7 : i32
    %c0_i32_133 = arith.constant 0 : i32
    %221 = tpu.memref_slice %arg2[%220, %c0_i32_133] : memref<50x32xf32, #tpu.memory_space<any>> -> memref<1x32xf32, #tpu.memory_space<any>>
    %c7_i32_134 = arith.constant 7 : i32
    %c0_i32_135 = arith.constant 0 : i32
    %222 = tpu.memref_slice %arg4[%c7_i32_134, %c0_i32_135] : memref<24x32xf32, #tpu.memory_space<vmem>> -> memref<1x32xf32, #tpu.memory_space<vmem>>
    %223 = tpu.memref_slice %arg5[%c7_i32_132] : memref<24x!tpu.dma_semaphore, #tpu.memory_space<semaphore_mem>> -> memref<1x!tpu.dma_semaphore, #tpu.memory_space<semaphore_mem>>
    %224 = tpu.memref_squeeze %223 : memref<1x!tpu.dma_semaphore, #tpu.memory_space<semaphore_mem>> -> memref<!tpu.dma_semaphore, #tpu.memory_space<semaphore_mem>>
    tpu.wait_dma2 semaphore(%224 : memref<!tpu.dma_semaphore, #tpu.memory_space<semaphore_mem>>) src(%221 : memref<1x32xf32, #tpu.memory_space<any>>) dst(%222 : memref<1x32xf32, #tpu.memory_space<vmem>>)
    %c8_i32_136 = arith.constant 8 : i32
    %225 = arith.addi %0, %c8_i32_136 : i32
    %226 = arith.index_cast %225 : i32 to index
    %227 = memref.load %arg1[%226] : memref<24xi32, #tpu.memory_space<smem>>
    %c8_i32_137 = arith.constant 8 : i32
    %c0_i32_138 = arith.constant 0 : i32
    %228 = tpu.memref_slice %arg2[%227, %c0_i32_138] : memref<50x32xf32, #tpu.memory_space<any>> -> memref<1x32xf32, #tpu.memory_space<any>>
    %c8_i32_139 = arith.constant 8 : i32
    %c0_i32_140 = arith.constant 0 : i32
    %229 = tpu.memref_slice %arg4[%c8_i32_139, %c0_i32_140] : memref<24x32xf32, #tpu.memory_space<vmem>> -> memref<1x32xf32, #tpu.memory_space<vmem>>
    %230 = tpu.memref_slice %arg5[%c8_i32_137] : memref<24x!tpu.dma_semaphore, #tpu.memory_space<semaphore_mem>> -> memref<1x!tpu.dma_semaphore, #tpu.memory_space<semaphore_mem>>
    %231 = tpu.memref_squeeze %230 : memref<1x!tpu.dma_semaphore, #tpu.memory_space<semaphore_mem>> -> memref<!tpu.dma_semaphore, #tpu.memory_space<semaphore_mem>>
    tpu.wait_dma2 semaphore(%231 : memref<!tpu.dma_semaphore, #tpu.memory_space<semaphore_mem>>) src(%228 : memref<1x32xf32, #tpu.memory_space<any>>) dst(%229 : memref<1x32xf32, #tpu.memory_space<vmem>>)
    %c9_i32_141 = arith.constant 9 : i32
    %232 = arith.addi %0, %c9_i32_141 : i32
    %233 = arith.index_cast %232 : i32 to index
    %234 = memref.load %arg1[%233] : memref<24xi32, #tpu.memory_space<smem>>
    %c9_i32_142 = arith.constant 9 : i32
    %c0_i32_143 = arith.constant 0 : i32
    %235 = tpu.memref_slice %arg2[%234, %c0_i32_143] : memref<50x32xf32, #tpu.memory_space<any>> -> memref<1x32xf32, #tpu.memory_space<any>>
    %c9_i32_144 = arith.constant 9 : i32
    %c0_i32_145 = arith.constant 0 : i32
    %236 = tpu.memref_slice %arg4[%c9_i32_144, %c0_i32_145] : memref<24x32xf32, #tpu.memory_space<vmem>> -> memref<1x32xf32, #tpu.memory_space<vmem>>
    %237 = tpu.memref_slice %arg5[%c9_i32_142] : memref<24x!tpu.dma_semaphore, #tpu.memory_space<semaphore_mem>> -> memref<1x!tpu.dma_semaphore, #tpu.memory_space<semaphore_mem>>
    %238 = tpu.memref_squeeze %237 : memref<1x!tpu.dma_semaphore, #tpu.memory_space<semaphore_mem>> -> memref<!tpu.dma_semaphore, #tpu.memory_space<semaphore_mem>>
    tpu.wait_dma2 semaphore(%238 : memref<!tpu.dma_semaphore, #tpu.memory_space<semaphore_mem>>) src(%235 : memref<1x32xf32, #tpu.memory_space<any>>) dst(%236 : memref<1x32xf32, #tpu.memory_space<vmem>>)
    %c10_i32_146 = arith.constant 10 : i32
    %239 = arith.addi %0, %c10_i32_146 : i32
    %240 = arith.index_cast %239 : i32 to index
    %241 = memref.load %arg1[%240] : memref<24xi32, #tpu.memory_space<smem>>
    %c10_i32_147 = arith.constant 10 : i32
    %c0_i32_148 = arith.constant 0 : i32
    %242 = tpu.memref_slice %arg2[%241, %c0_i32_148] : memref<50x32xf32, #tpu.memory_space<any>> -> memref<1x32xf32, #tpu.memory_space<any>>
    %c10_i32_149 = arith.constant 10 : i32
    %c0_i32_150 = arith.constant 0 : i32
    %243 = tpu.memref_slice %arg4[%c10_i32_149, %c0_i32_150] : memref<24x32xf32, #tpu.memory_space<vmem>> -> memref<1x32xf32, #tpu.memory_space<vmem>>
    %244 = tpu.memref_slice %arg5[%c10_i32_147] : memref<24x!tpu.dma_semaphore, #tpu.memory_space<semaphore_mem>> -> memref<1x!tpu.dma_semaphore, #tpu.memory_space<semaphore_mem>>
    %245 = tpu.memref_squeeze %244 : memref<1x!tpu.dma_semaphore, #tpu.memory_space<semaphore_mem>> -> memref<!tpu.dma_semaphore, #tpu.memory_space<semaphore_mem>>
    tpu.wait_dma2 semaphore(%245 : memref<!tpu.dma_semaphore, #tpu.memory_space<semaphore_mem>>) src(%242 : memref<1x32xf32, #tpu.memory_space<any>>) dst(%243 : memref<1x32xf32, #tpu.memory_space<vmem>>)
    %c11_i32_151 = arith.constant 11 : i32
    %246 = arith.addi %0, %c11_i32_151 : i32
    %247 = arith.index_cast %246 : i32 to index
    %248 = memref.load %arg1[%247] : memref<24xi32, #tpu.memory_space<smem>>
    %c11_i32_152 = arith.constant 11 : i32
    %c0_i32_153 = arith.constant 0 : i32
    %249 = tpu.memref_slice %arg2[%248, %c0_i32_153] : memref<50x32xf32, #tpu.memory_space<any>> -> memref<1x32xf32, #tpu.memory_space<any>>
    %c11_i32_154 = arith.constant 11 : i32
    %c0_i32_155 = arith.constant 0 : i32
    %250 = tpu.memref_slice %arg4[%c11_i32_154, %c0_i32_155] : memref<24x32xf32, #tpu.memory_space<vmem>> -> memref<1x32xf32, #tpu.memory_space<vmem>>
    %251 = tpu.memref_slice %arg5[%c11_i32_152] : memref<24x!tpu.dma_semaphore, #tpu.memory_space<semaphore_mem>> -> memref<1x!tpu.dma_semaphore, #tpu.memory_space<semaphore_mem>>
    %252 = tpu.memref_squeeze %251 : memref<1x!tpu.dma_semaphore, #tpu.memory_space<semaphore_mem>> -> memref<!tpu.dma_semaphore, #tpu.memory_space<semaphore_mem>>
    tpu.wait_dma2 semaphore(%252 : memref<!tpu.dma_semaphore, #tpu.memory_space<semaphore_mem>>) src(%249 : memref<1x32xf32, #tpu.memory_space<any>>) dst(%250 : memref<1x32xf32, #tpu.memory_space<vmem>>)
    %c12_i32_156 = arith.constant 12 : i32
    %253 = arith.addi %0, %c12_i32_156 : i32
    %254 = arith.index_cast %253 : i32 to index
    %255 = memref.load %arg1[%254] : memref<24xi32, #tpu.memory_space<smem>>
    %c12_i32_157 = arith.constant 12 : i32
    %c0_i32_158 = arith.constant 0 : i32
    %256 = tpu.memref_slice %arg2[%255, %c0_i32_158] : memref<50x32xf32, #tpu.memory_space<any>> -> memref<1x32xf32, #tpu.memory_space<any>>
    %c12_i32_159 = arith.constant 12 : i32
    %c0_i32_160 = arith.constant 0 : i32
    %257 = tpu.memref_slice %arg4[%c12_i32_159, %c0_i32_160] : memref<24x32xf32, #tpu.memory_space<vmem>> -> memref<1x32xf32, #tpu.memory_space<vmem>>
    %258 = tpu.memref_slice %arg5[%c12_i32_157] : memref<24x!tpu.dma_semaphore, #tpu.memory_space<semaphore_mem>> -> memref<1x!tpu.dma_semaphore, #tpu.memory_space<semaphore_mem>>
    %259 = tpu.memref_squeeze %258 : memref<1x!tpu.dma_semaphore, #tpu.memory_space<semaphore_mem>> -> memref<!tpu.dma_semaphore, #tpu.memory_space<semaphore_mem>>
    tpu.wait_dma2 semaphore(%259 : memref<!tpu.dma_semaphore, #tpu.memory_space<semaphore_mem>>) src(%256 : memref<1x32xf32, #tpu.memory_space<any>>) dst(%257 : memref<1x32xf32, #tpu.memory_space<vmem>>)
    %c13_i32_161 = arith.constant 13 : i32
    %260 = arith.addi %0, %c13_i32_161 : i32
    %261 = arith.index_cast %260 : i32 to index
    %262 = memref.load %arg1[%261] : memref<24xi32, #tpu.memory_space<smem>>
    %c13_i32_162 = arith.constant 13 : i32
    %c0_i32_163 = arith.constant 0 : i32
    %263 = tpu.memref_slice %arg2[%262, %c0_i32_163] : memref<50x32xf32, #tpu.memory_space<any>> -> memref<1x32xf32, #tpu.memory_space<any>>
    %c13_i32_164 = arith.constant 13 : i32
    %c0_i32_165 = arith.constant 0 : i32
    %264 = tpu.memref_slice %arg4[%c13_i32_164, %c0_i32_165] : memref<24x32xf32, #tpu.memory_space<vmem>> -> memref<1x32xf32, #tpu.memory_space<vmem>>
    %265 = tpu.memref_slice %arg5[%c13_i32_162] : memref<24x!tpu.dma_semaphore, #tpu.memory_space<semaphore_mem>> -> memref<1x!tpu.dma_semaphore, #tpu.memory_space<semaphore_mem>>
    %266 = tpu.memref_squeeze %265 : memref<1x!tpu.dma_semaphore, #tpu.memory_space<semaphore_mem>> -> memref<!tpu.dma_semaphore, #tpu.memory_space<semaphore_mem>>
    tpu.wait_dma2 semaphore(%266 : memref<!tpu.dma_semaphore, #tpu.memory_space<semaphore_mem>>) src(%263 : memref<1x32xf32, #tpu.memory_space<any>>) dst(%264 : memref<1x32xf32, #tpu.memory_space<vmem>>)
    %c14_i32_166 = arith.constant 14 : i32
    %267 = arith.addi %0, %c14_i32_166 : i32
    %268 = arith.index_cast %267 : i32 to index
    %269 = memref.load %arg1[%268] : memref<24xi32, #tpu.memory_space<smem>>
    %c14_i32_167 = arith.constant 14 : i32
    %c0_i32_168 = arith.constant 0 : i32
    %270 = tpu.memref_slice %arg2[%269, %c0_i32_168] : memref<50x32xf32, #tpu.memory_space<any>> -> memref<1x32xf32, #tpu.memory_space<any>>
    %c14_i32_169 = arith.constant 14 : i32
    %c0_i32_170 = arith.constant 0 : i32
    %271 = tpu.memref_slice %arg4[%c14_i32_169, %c0_i32_170] : memref<24x32xf32, #tpu.memory_space<vmem>> -> memref<1x32xf32, #tpu.memory_space<vmem>>
    %272 = tpu.memref_slice %arg5[%c14_i32_167] : memref<24x!tpu.dma_semaphore, #tpu.memory_space<semaphore_mem>> -> memref<1x!tpu.dma_semaphore, #tpu.memory_space<semaphore_mem>>
    %273 = tpu.memref_squeeze %272 : memref<1x!tpu.dma_semaphore, #tpu.memory_space<semaphore_mem>> -> memref<!tpu.dma_semaphore, #tpu.memory_space<semaphore_mem>>
    tpu.wait_dma2 semaphore(%273 : memref<!tpu.dma_semaphore, #tpu.memory_space<semaphore_mem>>) src(%270 : memref<1x32xf32, #tpu.memory_space<any>>) dst(%271 : memref<1x32xf32, #tpu.memory_space<vmem>>)
    %c15_i32_171 = arith.constant 15 : i32
    %274 = arith.addi %0, %c15_i32_171 : i32
    %275 = arith.index_cast %274 : i32 to index
    %276 = memref.load %arg1[%275] : memref<24xi32, #tpu.memory_space<smem>>
    %c15_i32_172 = arith.constant 15 : i32
    %c0_i32_173 = arith.constant 0 : i32
    %277 = tpu.memref_slice %arg2[%276, %c0_i32_173] : memref<50x32xf32, #tpu.memory_space<any>> -> memref<1x32xf32, #tpu.memory_space<any>>
    %c15_i32_174 = arith.constant 15 : i32
    %c0_i32_175 = arith.constant 0 : i32
    %278 = tpu.memref_slice %arg4[%c15_i32_174, %c0_i32_175] : memref<24x32xf32, #tpu.memory_space<vmem>> -> memref<1x32xf32, #tpu.memory_space<vmem>>
    %279 = tpu.memref_slice %arg5[%c15_i32_172] : memref<24x!tpu.dma_semaphore, #tpu.memory_space<semaphore_mem>> -> memref<1x!tpu.dma_semaphore, #tpu.memory_space<semaphore_mem>>
    %280 = tpu.memref_squeeze %279 : memref<1x!tpu.dma_semaphore, #tpu.memory_space<semaphore_mem>> -> memref<!tpu.dma_semaphore, #tpu.memory_space<semaphore_mem>>
    tpu.wait_dma2 semaphore(%280 : memref<!tpu.dma_semaphore, #tpu.memory_space<semaphore_mem>>) src(%277 : memref<1x32xf32, #tpu.memory_space<any>>) dst(%278 : memref<1x32xf32, #tpu.memory_space<vmem>>)
    %c16_i32_176 = arith.constant 16 : i32
    %281 = arith.addi %0, %c16_i32_176 : i32
    %282 = arith.index_cast %281 : i32 to index
    %283 = memref.load %arg1[%282] : memref<24xi32, #tpu.memory_space<smem>>
    %c16_i32_177 = arith.constant 16 : i32
    %c0_i32_178 = arith.constant 0 : i32
    %284 = tpu.memref_slice %arg2[%283, %c0_i32_178] : memref<50x32xf32, #tpu.memory_space<any>> -> memref<1x32xf32, #tpu.memory_space<any>>
    %c16_i32_179 = arith.constant 16 : i32
    %c0_i32_180 = arith.constant 0 : i32
    %285 = tpu.memref_slice %arg4[%c16_i32_179, %c0_i32_180] : memref<24x32xf32, #tpu.memory_space<vmem>> -> memref<1x32xf32, #tpu.memory_space<vmem>>
    %286 = tpu.memref_slice %arg5[%c16_i32_177] : memref<24x!tpu.dma_semaphore, #tpu.memory_space<semaphore_mem>> -> memref<1x!tpu.dma_semaphore, #tpu.memory_space<semaphore_mem>>
    %287 = tpu.memref_squeeze %286 : memref<1x!tpu.dma_semaphore, #tpu.memory_space<semaphore_mem>> -> memref<!tpu.dma_semaphore, #tpu.memory_space<semaphore_mem>>
    tpu.wait_dma2 semaphore(%287 : memref<!tpu.dma_semaphore, #tpu.memory_space<semaphore_mem>>) src(%284 : memref<1x32xf32, #tpu.memory_space<any>>) dst(%285 : memref<1x32xf32, #tpu.memory_space<vmem>>)
    %c17_i32_181 = arith.constant 17 : i32
    %288 = arith.addi %0, %c17_i32_181 : i32
    %289 = arith.index_cast %288 : i32 to index
    %290 = memref.load %arg1[%289] : memref<24xi32, #tpu.memory_space<smem>>
    %c17_i32_182 = arith.constant 17 : i32
    %c0_i32_183 = arith.constant 0 : i32
    %291 = tpu.memref_slice %arg2[%290, %c0_i32_183] : memref<50x32xf32, #tpu.memory_space<any>> -> memref<1x32xf32, #tpu.memory_space<any>>
    %c17_i32_184 = arith.constant 17 : i32
    %c0_i32_185 = arith.constant 0 : i32
    %292 = tpu.memref_slice %arg4[%c17_i32_184, %c0_i32_185] : memref<24x32xf32, #tpu.memory_space<vmem>> -> memref<1x32xf32, #tpu.memory_space<vmem>>
    %293 = tpu.memref_slice %arg5[%c17_i32_182] : memref<24x!tpu.dma_semaphore, #tpu.memory_space<semaphore_mem>> -> memref<1x!tpu.dma_semaphore, #tpu.memory_space<semaphore_mem>>
    %294 = tpu.memref_squeeze %293 : memref<1x!tpu.dma_semaphore, #tpu.memory_space<semaphore_mem>> -> memref<!tpu.dma_semaphore, #tpu.memory_space<semaphore_mem>>
    tpu.wait_dma2 semaphore(%294 : memref<!tpu.dma_semaphore, #tpu.memory_space<semaphore_mem>>) src(%291 : memref<1x32xf32, #tpu.memory_space<any>>) dst(%292 : memref<1x32xf32, #tpu.memory_space<vmem>>)
    %c18_i32_186 = arith.constant 18 : i32
    %295 = arith.addi %0, %c18_i32_186 : i32
    %296 = arith.index_cast %295 : i32 to index
    %297 = memref.load %arg1[%296] : memref<24xi32, #tpu.memory_space<smem>>
    %c18_i32_187 = arith.constant 18 : i32
    %c0_i32_188 = arith.constant 0 : i32
    %298 = tpu.memref_slice %arg2[%297, %c0_i32_188] : memref<50x32xf32, #tpu.memory_space<any>> -> memref<1x32xf32, #tpu.memory_space<any>>
    %c18_i32_189 = arith.constant 18 : i32
    %c0_i32_190 = arith.constant 0 : i32
    %299 = tpu.memref_slice %arg4[%c18_i32_189, %c0_i32_190] : memref<24x32xf32, #tpu.memory_space<vmem>> -> memref<1x32xf32, #tpu.memory_space<vmem>>
    %300 = tpu.memref_slice %arg5[%c18_i32_187] : memref<24x!tpu.dma_semaphore, #tpu.memory_space<semaphore_mem>> -> memref<1x!tpu.dma_semaphore, #tpu.memory_space<semaphore_mem>>
    %301 = tpu.memref_squeeze %300 : memref<1x!tpu.dma_semaphore, #tpu.memory_space<semaphore_mem>> -> memref<!tpu.dma_semaphore, #tpu.memory_space<semaphore_mem>>
    tpu.wait_dma2 semaphore(%301 : memref<!tpu.dma_semaphore, #tpu.memory_space<semaphore_mem>>) src(%298 : memref<1x32xf32, #tpu.memory_space<any>>) dst(%299 : memref<1x32xf32, #tpu.memory_space<vmem>>)
    %c19_i32_191 = arith.constant 19 : i32
    %302 = arith.addi %0, %c19_i32_191 : i32
    %303 = arith.index_cast %302 : i32 to index
    %304 = memref.load %arg1[%303] : memref<24xi32, #tpu.memory_space<smem>>
    %c19_i32_192 = arith.constant 19 : i32
    %c0_i32_193 = arith.constant 0 : i32
    %305 = tpu.memref_slice %arg2[%304, %c0_i32_193] : memref<50x32xf32, #tpu.memory_space<any>> -> memref<1x32xf32, #tpu.memory_space<any>>
    %c19_i32_194 = arith.constant 19 : i32
    %c0_i32_195 = arith.constant 0 : i32
    %306 = tpu.memref_slice %arg4[%c19_i32_194, %c0_i32_195] : memref<24x32xf32, #tpu.memory_space<vmem>> -> memref<1x32xf32, #tpu.memory_space<vmem>>
    %307 = tpu.memref_slice %arg5[%c19_i32_192] : memref<24x!tpu.dma_semaphore, #tpu.memory_space<semaphore_mem>> -> memref<1x!tpu.dma_semaphore, #tpu.memory_space<semaphore_mem>>
    %308 = tpu.memref_squeeze %307 : memref<1x!tpu.dma_semaphore, #tpu.memory_space<semaphore_mem>> -> memref<!tpu.dma_semaphore, #tpu.memory_space<semaphore_mem>>
    tpu.wait_dma2 semaphore(%308 : memref<!tpu.dma_semaphore, #tpu.memory_space<semaphore_mem>>) src(%305 : memref<1x32xf32, #tpu.memory_space<any>>) dst(%306 : memref<1x32xf32, #tpu.memory_space<vmem>>)
    %c20_i32_196 = arith.constant 20 : i32
    %309 = arith.addi %0, %c20_i32_196 : i32
    %310 = arith.index_cast %309 : i32 to index
    %311 = memref.load %arg1[%310] : memref<24xi32, #tpu.memory_space<smem>>
    %c20_i32_197 = arith.constant 20 : i32
    %c0_i32_198 = arith.constant 0 : i32
    %312 = tpu.memref_slice %arg2[%311, %c0_i32_198] : memref<50x32xf32, #tpu.memory_space<any>> -> memref<1x32xf32, #tpu.memory_space<any>>
    %c20_i32_199 = arith.constant 20 : i32
    %c0_i32_200 = arith.constant 0 : i32
    %313 = tpu.memref_slice %arg4[%c20_i32_199, %c0_i32_200] : memref<24x32xf32, #tpu.memory_space<vmem>> -> memref<1x32xf32, #tpu.memory_space<vmem>>
    %314 = tpu.memref_slice %arg5[%c20_i32_197] : memref<24x!tpu.dma_semaphore, #tpu.memory_space<semaphore_mem>> -> memref<1x!tpu.dma_semaphore, #tpu.memory_space<semaphore_mem>>
    %315 = tpu.memref_squeeze %314 : memref<1x!tpu.dma_semaphore, #tpu.memory_space<semaphore_mem>> -> memref<!tpu.dma_semaphore, #tpu.memory_space<semaphore_mem>>
    tpu.wait_dma2 semaphore(%315 : memref<!tpu.dma_semaphore, #tpu.memory_space<semaphore_mem>>) src(%312 : memref<1x32xf32, #tpu.memory_space<any>>) dst(%313 : memref<1x32xf32, #tpu.memory_space<vmem>>)
    %c21_i32_201 = arith.constant 21 : i32
    %316 = arith.addi %0, %c21_i32_201 : i32
    %317 = arith.index_cast %316 : i32 to index
    %318 = memref.load %arg1[%317] : memref<24xi32, #tpu.memory_space<smem>>
    %c21_i32_202 = arith.constant 21 : i32
    %c0_i32_203 = arith.constant 0 : i32
    %319 = tpu.memref_slice %arg2[%318, %c0_i32_203] : memref<50x32xf32, #tpu.memory_space<any>> -> memref<1x32xf32, #tpu.memory_space<any>>
    %c21_i32_204 = arith.constant 21 : i32
    %c0_i32_205 = arith.constant 0 : i32
    %320 = tpu.memref_slice %arg4[%c21_i32_204, %c0_i32_205] : memref<24x32xf32, #tpu.memory_space<vmem>> -> memref<1x32xf32, #tpu.memory_space<vmem>>
    %321 = tpu.memref_slice %arg5[%c21_i32_202] : memref<24x!tpu.dma_semaphore, #tpu.memory_space<semaphore_mem>> -> memref<1x!tpu.dma_semaphore, #tpu.memory_space<semaphore_mem>>
    %322 = tpu.memref_squeeze %321 : memref<1x!tpu.dma_semaphore, #tpu.memory_space<semaphore_mem>> -> memref<!tpu.dma_semaphore, #tpu.memory_space<semaphore_mem>>
    tpu.wait_dma2 semaphore(%322 : memref<!tpu.dma_semaphore, #tpu.memory_space<semaphore_mem>>) src(%319 : memref<1x32xf32, #tpu.memory_space<any>>) dst(%320 : memref<1x32xf32, #tpu.memory_space<vmem>>)
    %c22_i32_206 = arith.constant 22 : i32
    %323 = arith.addi %0, %c22_i32_206 : i32
    %324 = arith.index_cast %323 : i32 to index
    %325 = memref.load %arg1[%324] : memref<24xi32, #tpu.memory_space<smem>>
    %c22_i32_207 = arith.constant 22 : i32
    %c0_i32_208 = arith.constant 0 : i32
    %326 = tpu.memref_slice %arg2[%325, %c0_i32_208] : memref<50x32xf32, #tpu.memory_space<any>> -> memref<1x32xf32, #tpu.memory_space<any>>
    %c22_i32_209 = arith.constant 22 : i32
    %c0_i32_210 = arith.constant 0 : i32
    %327 = tpu.memref_slice %arg4[%c22_i32_209, %c0_i32_210] : memref<24x32xf32, #tpu.memory_space<vmem>> -> memref<1x32xf32, #tpu.memory_space<vmem>>
    %328 = tpu.memref_slice %arg5[%c22_i32_207] : memref<24x!tpu.dma_semaphore, #tpu.memory_space<semaphore_mem>> -> memref<1x!tpu.dma_semaphore, #tpu.memory_space<semaphore_mem>>
    %329 = tpu.memref_squeeze %328 : memref<1x!tpu.dma_semaphore, #tpu.memory_space<semaphore_mem>> -> memref<!tpu.dma_semaphore, #tpu.memory_space<semaphore_mem>>
    tpu.wait_dma2 semaphore(%329 : memref<!tpu.dma_semaphore, #tpu.memory_space<semaphore_mem>>) src(%326 : memref<1x32xf32, #tpu.memory_space<any>>) dst(%327 : memref<1x32xf32, #tpu.memory_space<vmem>>)
    %c23_i32_211 = arith.constant 23 : i32
    %330 = arith.addi %0, %c23_i32_211 : i32
    %331 = arith.index_cast %330 : i32 to index
    %332 = memref.load %arg1[%331] : memref<24xi32, #tpu.memory_space<smem>>
    %c23_i32_212 = arith.constant 23 : i32
    %c0_i32_213 = arith.constant 0 : i32
    %333 = tpu.memref_slice %arg2[%332, %c0_i32_213] : memref<50x32xf32, #tpu.memory_space<any>> -> memref<1x32xf32, #tpu.memory_space<any>>
    %c23_i32_214 = arith.constant 23 : i32
    %c0_i32_215 = arith.constant 0 : i32
    %334 = tpu.memref_slice %arg4[%c23_i32_214, %c0_i32_215] : memref<24x32xf32, #tpu.memory_space<vmem>> -> memref<1x32xf32, #tpu.memory_space<vmem>>
    %335 = tpu.memref_slice %arg5[%c23_i32_212] : memref<24x!tpu.dma_semaphore, #tpu.memory_space<semaphore_mem>> -> memref<1x!tpu.dma_semaphore, #tpu.memory_space<semaphore_mem>>
    %336 = tpu.memref_squeeze %335 : memref<1x!tpu.dma_semaphore, #tpu.memory_space<semaphore_mem>> -> memref<!tpu.dma_semaphore, #tpu.memory_space<semaphore_mem>>
    tpu.wait_dma2 semaphore(%336 : memref<!tpu.dma_semaphore, #tpu.memory_space<semaphore_mem>>) src(%333 : memref<1x32xf32, #tpu.memory_space<any>>) dst(%334 : memref<1x32xf32, #tpu.memory_space<vmem>>)
    %c0 = arith.constant 0 : index
    %c0_216 = arith.constant 0 : index
    %337 = vector.load %arg4[%c0, %c0_216] : memref<24x32xf32, #tpu.memory_space<vmem>>, vector<24x32xf32>
    %c0_217 = arith.constant 0 : index
    %c0_218 = arith.constant 0 : index
    %338 = vector.load %arg3[%c0_217, %c0_218] : memref<24x32xf32, #tpu.memory_space<vmem>>, vector<24x32xf32>
    tpu.vector_store %arg3[%c0_217, %c0_218], %337 {strides = array<i32>} : memref<24x32xf32, #tpu.memory_space<vmem>>, vector<24x32xf32>,
    return
  }
  func.func @transform_1(%arg0: i32, %arg1: memref<24xi32, #tpu.memory_space<smem>>) -> (i32, i32) {
    %c0_i32 = arith.constant 0 : i32
    %c0_i32_0 = arith.constant 0 : i32
    return %arg0, %c0_i32 : i32, i32
  }
}

</mosaic_0001>

<bundles_post_ra>
// kernel: tpu_custom_call.1
= control target key start
LH: loop header
LB: loop body
LE: loop exit
PB: predicated region body
PF: predicated region fallthrough
CT: control target
= control target key end

     0   :  { %s1981_s0 = inlined_call_operand.vmem [shape: s32[24], index: 0, kind: input, shape index: {}]   ;;  %s1982_s1 = inlined_call_operand.vmem [shape: f32[50,32], index: 1, kind: input, shape index: {}]   ;;  %s1983_s2 = inlined_call_operand.hbm [shape: f32[24,32], index: 2, kind: output, shape index: {}]  }
   0x1   :  { %s7_s11 = sshll.u32 %s1981_s0, 4  ;;  %s8_s11 = int_to_ptr.vmem [resolvable:$true] %s7_s11 }
   0x2   :  { %s1789_s12 = scalar_lea.vmem %s8_s11, 16  ;;  %p1794_p1 = scmp.lt.s32.totalorder %s8_s11, %s8_s11 }
   0x3   :  { %p1790_p0 = scmp.ne.s32.totalorder %s8_s11, %s1789_s12  ;;  %p1795_p2 = scmp.lt.s32.totalorder %s1789_s12, %s1789_s12 }
   0x5   :  { %p1796_p3 = por %p1795_p2, %p1794_p1 }
   0x7   :  { %p1797_p4 = pnand %p1796_p3, %p1790_p0 }
   0x9   :  { %1800 = shalt.err (!%p1797_p4)  }
   0xa   :  { %s1875_s13 = smov [#allocation5]  }
   0xb   :  { %10 = dma.vmem_to_smem %s8_s11, 16, %s1875_s13, [#allocation4] }
   0xc   :  { %1823 = dma.done.wait [#allocation4], 16 }
   0xd   :  { %1824 = vsyncadd [#allocation4], 4294967280 }
   0xe   :  { %12 = sfence }
   0xf   :  { %13 = vsyncpa [#allocation7], 0  ;;  %s15_s14 = sld [smem:[#allocation5]] }
  0x15   :  { %s16_s17 = scalar_lea.vmem %s1982_s1, %s15_s14 }
  0x16   :  { %v34_v0 = vld [vmem:[%s16_s17] sm:$0x1] }
  0x17   :  { %35 = vst [vmem:[#allocation2] sm:$0x1] %v34_v0 }
  0x18   :  { %60 = vsyncadd [#allocation3], 16  ;;  %s1738_s0 = sld [smem:[#allocation5 + $0x1]] }
  0x1e   :  { %s63_s20 = scalar_lea.vmem %s1982_s1, %s1738_s0 }
  0x1f   :  { %v83_v1 = vld [vmem:[%s63_s20] sm:$0x1] }
  0x20   :  { %84 = vst [vmem:[#allocation2 + $0x1] sm:$0x1] %v83_v1 }
  0x21   :  { %109 = vsyncadd [#allocation3 + $0x1], 16  ;;  %s1739_s21 = sld [smem:[#allocation5 + $0x2]] }
  0x27   :  { %s112_s24 = scalar_lea.vmem %s1982_s1, %s1739_s21 }
  0x28   :  { %v132_v2 = vld [vmem:[%s112_s24] sm:$0x1] }
  0x29   :  { %133 = vst [vmem:[#allocation2 + $0x2] sm:$0x1] %v132_v2 }
  0x2a   :  { %158 = vsyncadd [#allocation3 + $0x2], 16  ;;  %s1740_s25 = sld [smem:[#allocation5 + $0x3]] }
  0x30   :  { %s161_s28 = scalar_lea.vmem %s1982_s1, %s1740_s25 }
  0x31   :  { %v181_v3 = vld [vmem:[%s161_s28] sm:$0x1] }
  0x32   :  { %182 = vst [vmem:[#allocation2 + $0x3] sm:$0x1] %v181_v3 }
  0x33   :  { %207 = vsyncadd [#allocation3 + $0x3], 16  ;;  %s1741_s29 = sld [smem:[#allocation5 + $0x4]] }
  0x39   :  { %s210_s4 = scalar_lea.vmem %s1982_s1, %s1741_s29 }
  0x3a   :  { %v230_v4 = vld [vmem:[%s210_s4] sm:$0x1] }
  0x3b   :  { %231 = vst [vmem:[#allocation2 + $0x4] sm:$0x1] %v230_v4 }
  0x3c   :  { %256 = vsyncadd [#allocation3 + $0x4], 16  ;;  %s1742_s5 = sld [smem:[#allocation5 + $0x5]] }
  0x42   :  { %s259_s8 = scalar_lea.vmem %s1982_s1, %s1742_s5 }
  0x43   :  { %v279_v5 = vld [vmem:[%s259_s8] sm:$0x1] }
  0x44   :  { %280 = vst [vmem:[#allocation2 + $0x5] sm:$0x1] %v279_v5 }
  0x45   :  { %305 = vsyncadd [#allocation3 + $0x5], 16  ;;  %s1743_s9 = sld [smem:[#allocation5 + $0x6]] }
  0x4b   :  { %s308_s12 = scalar_lea.vmem %s1982_s1, %s1743_s9 }
  0x4c   :  { %v328_v6 = vld [vmem:[%s308_s12] sm:$0x1] }
  0x4d   :  { %329 = vst [vmem:[#allocation2 + $0x6] sm:$0x1] %v328_v6 }
  0x4e   :  { %354 = vsyncadd [#allocation3 + $0x6], 16  ;;  %s1744_s13 = sld [smem:[#allocation5 + $0x7]] }
  0x54   :  { %s357_s16 = scalar_lea.vmem %s1982_s1, %s1744_s13 }
  0x55   :  { %v377_v7 = vld [vmem:[%s357_s16] sm:$0x1] }
  0x56   :  { %378 = vst [vmem:[#allocation2 + $0x7] sm:$0x1] %v377_v7 }
  0x57   :  { %403 = vsyncadd [#allocation3 + $0x7], 16  ;;  %s1745_s17 = sld [smem:[#allocation5 + $0x8]] }
  0x5d   :  { %s406_s19 = scalar_lea.vmem %s1982_s1, %s1745_s17 }
  0x5e   :  { %v426_v8 = vld [vmem:[%s406_s19] sm:$0x1] }
  0x5f   :  { %427 = vst [vmem:[#allocation2 + $0x8] sm:$0x1] %v426_v8 }
  0x60   :  { %452 = vsyncadd [#allocation3 + $0x8], 16  ;;  %s1746_s20 = sld [smem:[#allocation5 + $0x9]] }
  0x66   :  { %s455_s23 = scalar_lea.vmem %s1982_s1, %s1746_s20 }
  0x67   :  { %v475_v9 = vld [vmem:[%s455_s23] sm:$0x1] }
  0x68   :  { %476 = vst [vmem:[#allocation2 + $0x9] sm:$0x1] %v475_v9 }
  0x69   :  { %501 = vsyncadd [#allocation3 + $0x9], 16  ;;  %s1747_s24 = sld [smem:[#allocation5 + $0xa]] }
  0x6f   :  { %s504_s27 = scalar_lea.vmem %s1982_s1, %s1747_s24 }
  0x70   :  { %v524_v10 = vld [vmem:[%s504_s27] sm:$0x1] }
  0x71   :  { %525 = vst [vmem:[#allocation2 + $0xa] sm:$0x1] %v524_v10 }
  0x72   :  { %550 = vsyncadd [#allocation3 + $0xa], 16  ;;  %s1748_s28 = sld [smem:[#allocation5 + $0xb]] }
  0x78   :  { %s553_s3 = scalar_lea.vmem %s1982_s1, %s1748_s28 }
  0x79   :  { %v573_v11 = vld [vmem:[%s553_s3] sm:$0x1] }
  0x7a   :  { %574 = vst [vmem:[#allocation2 + $0xb] sm:$0x1] %v573_v11 }
  0x7b   :  { %599 = vsyncadd [#allocation3 + $0xb], 16  ;;  %s1749_s4 = sld [smem:[#allocation5 + $0xc]] }
  0x81   :  { %s602_s7 = scalar_lea.vmem %s1982_s1, %s1749_s4 }
  0x82   :  { %v622_v12 = vld [vmem:[%s602_s7] sm:$0x1] }
  0x83   :  { %623 = vst [vmem:[#allocation2 + $0xc] sm:$0x1] %v622_v12 }
  0x84   :  { %648 = vsyncadd [#allocation3 + $0xc], 16  ;;  %s1750_s8 = sld [smem:[#allocation5 + $0xd]] }
  0x8a   :  { %s651_s11 = scalar_lea.vmem %s1982_s1, %s1750_s8 }
  0x8b   :  { %v671_v13 = vld [vmem:[%s651_s11] sm:$0x1] }
  0x8c   :  { %672 = vst [vmem:[#allocation2 + $0xd] sm:$0x1] %v671_v13 }
  0x8d   :  { %697 = vsyncadd [#allocation3 + $0xd], 16  ;;  %s1751_s12 = sld [smem:[#allocation5 + $0xe]] }
  0x93   :  { %s700_s15 = scalar_lea.vmem %s1982_s1, %s1751_s12 }
  0x94   :  { %v720_v14 = vld [vmem:[%s700_s15] sm:$0x1] }
  0x95   :  { %721 = vst [vmem:[#allocation2 + $0xe] sm:$0x1] %v720_v14 }
  0x96   :  { %746 = vsyncadd [#allocation3 + $0xe], 16  ;;  %s1752_s16 = sld [smem:[#allocation5 + $0xf]] }
  0x9c   :  { %s749_s18 = scalar_lea.vmem %s1982_s1, %s1752_s16 }
  0x9d   :  { %v769_v15 = vld [vmem:[%s749_s18] sm:$0x1] }
  0x9e   :  { %770 = vst [vmem:[#allocation2 + $0xf] sm:$0x1] %v769_v15 }
  0x9f   :  { %795 = vsyncadd [#allocation3 + $0xf], 16  ;;  %s1753_s19 = sld [smem:[#allocation5 + $0x10]] }
  0xa5   :  { %s798_s22 = scalar_lea.vmem %s1982_s1, %s1753_s19 }
  0xa6   :  { %v818_v16 = vld [vmem:[%s798_s22] sm:$0x1] }
  0xa7   :  { %819 = vst [vmem:[#allocation2 + $0x10] sm:$0x1] %v818_v16 }
  0xa8   :  { %844 = vsyncadd [#allocation3 + $0x10], 16  ;;  %s1754_s23 = sld [smem:[#allocation5 + $0x11]] }
  0xae   :  { %s847_s26 = scalar_lea.vmem %s1982_s1, %s1754_s23 }
  0xaf   :  { %v867_v17 = vld [vmem:[%s847_s26] sm:$0x1] }
  0xb0   :  { %868 = vst [vmem:[#allocation2 + $0x11] sm:$0x1] %v867_v17 }
  0xb1   :  { %893 = vsyncadd [#allocation3 + $0x11], 16  ;;  %s1755_s27 = sld [smem:[#allocation5 + $0x12]] }
  0xb7   :  { %s896_s30 = scalar_lea.vmem %s1982_s1, %s1755_s27 }
  0xb8   :  { %v916_v18 = vld [vmem:[%s896_s30] sm:$0x1] }
  0xb9   :  { %917 = vst [vmem:[#allocation2 + $0x12] sm:$0x1] %v916_v18 }
  0xba   :  { %942 = vsyncadd [#allocation3 + $0x12], 16  ;;  %s1756_s3 = sld [smem:[#allocation5 + $0x13]] }
  0xc0   :  { %s945_s6 = scalar_lea.vmem %s1982_s1, %s1756_s3 }
  0xc1   :  { %v965_v19 = vld [vmem:[%s945_s6] sm:$0x1] }
  0xc2   :  { %966 = vst [vmem:[#allocation2 + $0x13] sm:$0x1] %v965_v19 }
  0xc3   :  { %991 = vsyncadd [#allocation3 + $0x13], 16  ;;  %s1757_s7 = sld [smem:[#allocation5 + $0x14]] }
  0xc9   :  { %s994_s10 = scalar_lea.vmem %s1982_s1, %s1757_s7 }
  0xca   :  { %v1014_v20 = vld [vmem:[%s994_s10] sm:$0x1] }
  0xcb   :  { %1015 = vst [vmem:[#allocation2 + $0x14] sm:$0x1] %v1014_v20 }
  0xcc   :  { %1040 = vsyncadd [#allocation3 + $0x14], 16  ;;  %s1758_s11 = sld [smem:[#allocation5 + $0x15]] }
  0xd2   :  { %s1043_s14 = scalar_lea.vmem %s1982_s1, %s1758_s11 }
  0xd3   :  { %v1063_v21 = vld [vmem:[%s1043_s14] sm:$0x1] }
  0xd4   :  { %1064 = vst [vmem:[#allocation2 + $0x15] sm:$0x1] %v1063_v21 }
  0xd5   :  { %1089 = vsyncadd [#allocation3 + $0x15], 16  ;;  %s1759_s15 = sld [smem:[#allocation5 + $0x16]] }
  0xdb   :  { %s1092_s0 = scalar_lea.vmem %s1982_s1, %s1759_s15 }
  0xdc   :  { %v1112_v22 = vld [vmem:[%s1092_s0] sm:$0x1] }
  0xdd   :  { %1113 = vst [vmem:[#allocation2 + $0x16] sm:$0x1] %v1112_v22 }
  0xde   :  { %1138 = vsyncadd [#allocation3 + $0x16], 16  ;;  %s1760_s18 = sld [smem:[#allocation5 + $0x17]] }
  0xe4   :  { %s1141_s21 = scalar_lea.vmem %s1982_s1, %s1760_s18 }
  0xe5   :  { %v1161_v23 = vld [vmem:[%s1141_s21] sm:$0x1] }
  0xe6   :  { %1162 = vst [vmem:[#allocation2 + $0x17] sm:$0x1] %v1161_v23 }
  0xe7   :  { %1187 = vsyncadd [#allocation3 + $0x17], 16 }
  0xe8   :  { %1825 = dma.done.wait [#allocation3], 16 }
  0xe9   :  { %1826 = vsyncadd [#allocation3], 4294967280 }
  0xea   :  { %1827 = dma.done.wait [#allocation3 + $0x1], 16 }
  0xeb   :  { %1828 = vsyncadd [#allocation3 + $0x1], 4294967280 }
  0xec   :  { %1829 = dma.done.wait [#allocation3 + $0x2], 16 }
  0xed   :  { %1830 = vsyncadd [#allocation3 + $0x2], 4294967280 }
  0xee   :  { %1831 = dma.done.wait [#allocation3 + $0x3], 16 }
  0xef   :  { %1832 = vsyncadd [#allocation3 + $0x3], 4294967280 }
  0xf0   :  { %1833 = dma.done.wait [#allocation3 + $0x4], 16 }
  0xf1   :  { %1834 = vsyncadd [#allocation3 + $0x4], 4294967280 }
  0xf2   :  { %1835 = dma.done.wait [#allocation3 + $0x5], 16 }
  0xf3   :  { %1836 = vsyncadd [#allocation3 + $0x5], 4294967280 }
  0xf4   :  { %1837 = dma.done.wait [#allocation3 + $0x6], 16 }
  0xf5   :  { %1838 = vsyncadd [#allocation3 + $0x6], 4294967280 }
  0xf6   :  { %1839 = dma.done.wait [#allocation3 + $0x7], 16 }
  0xf7   :  { %1840 = vsyncadd [#allocation3 + $0x7], 4294967280 }
  0xf8   :  { %1841 = dma.done.wait [#allocation3 + $0x8], 16 }
  0xf9   :  { %1842 = vsyncadd [#allocation3 + $0x8], 4294967280 }
  0xfa   :  { %1843 = dma.done.wait [#allocation3 + $0x9], 16 }
  0xfb   :  { %1844 = vsyncadd [#allocation3 + $0x9], 4294967280 }
  0xfc   :  { %1845 = dma.done.wait [#allocation3 + $0xa], 16 }
  0xfd   :  { %1846 = vsyncadd [#allocation3 + $0xa], 4294967280 }
  0xfe   :  { %1847 = dma.done.wait [#allocation3 + $0xb], 16 }
  0xff   :  { %1848 = vsyncadd [#allocation3 + $0xb], 4294967280 }
 0x100   :  { %1849 = dma.done.wait [#allocation3 + $0xc], 16 }
 0x101   :  { %1850 = vsyncadd [#allocation3 + $0xc], 4294967280 }
 0x102   :  { %1851 = dma.done.wait [#allocation3 + $0xd], 16 }
 0x103   :  { %1852 = vsyncadd [#allocation3 + $0xd], 4294967280 }
 0x104   :  { %1853 = dma.done.wait [#allocation3 + $0xe], 16 }
 0x105   :  { %1854 = vsyncadd [#allocation3 + $0xe], 4294967280 }
 0x106   :  { %1855 = dma.done.wait [#allocation3 + $0xf], 16 }
 0x107   :  { %1856 = vsyncadd [#allocation3 + $0xf], 4294967280 }
 0x108   :  { %1857 = dma.done.wait [#allocation3 + $0x10], 16 }
 0x109   :  { %1858 = vsyncadd [#allocation3 + $0x10], 4294967280 }
 0x10a   :  { %1859 = dma.done.wait [#allocation3 + $0x11], 16 }
 0x10b   :  { %1860 = vsyncadd [#allocation3 + $0x11], 4294967280 }
 0x10c   :  { %1861 = dma.done.wait [#allocation3 + $0x12], 16 }
 0x10d   :  { %1862 = vsyncadd [#allocation3 + $0x12], 4294967280 }
 0x10e   :  { %1863 = dma.done.wait [#allocation3 + $0x13], 16 }
 0x10f   :  { %1864 = vsyncadd [#allocation3 + $0x13], 4294967280 }
 0x110   :  { %1865 = dma.done.wait [#allocation3 + $0x14], 16 }
 0x111   :  { %1866 = vsyncadd [#allocation3 + $0x14], 4294967280 }
 0x112   :  { %1867 = dma.done.wait [#allocation3 + $0x15], 16 }
 0x113   :  { %1868 = vsyncadd [#allocation3 + $0x15], 4294967280 }
 0x114   :  { %1869 = dma.done.wait [#allocation3 + $0x16], 16 }
 0x115   :  { %1870 = vsyncadd [#allocation3 + $0x16], 4294967280 }
 0x116   :  { %1871 = dma.done.wait [#allocation3 + $0x17], 16 }
 0x117   :  { %1872 = vsyncadd [#allocation3 + $0x17], 4294967280  ;;  %s1876_s1 = smov [#allocation6]   ;;  %vm1264_vm0 = vcmask 261120   ;;  %v1261_v24 = vld [vmem:[#allocation2] sm:$0xff]  ;;  %v1262_v25 = vld [vmem:[#allocation2 + $0x8] sm:$0xff] }
 0x118   :  { %s1273_s22 = sshll.u32 %s1876_s1, 4  ;;  %v1263_v26 = vld [vmem:[#allocation2 + $0x10] sm:$0xff]  ;;  %1265 = vst.msk [vmem:[#allocation6] sm:$0xff] %vm1264_vm0, %v1261_v24  ;;  %1266 = vst.msk [vmem:[#allocation6 + $0x8] sm:$0xff] %vm1264_vm0, %v1262_v25  ;;  %s1274_s22 = int_to_ptr.vmem [resolvable:$true] %s1273_s22 }
 0x119   :  { %1267 = vst.msk [vmem:[#allocation6 + $0x10] sm:$0xff] %vm1264_vm0, %v1263_v26  ;;  %s1801_s23 = scalar_lea.vmem %s1274_s22, 384  ;;  %p1806_p6 = scmp.lt.s32.totalorder %s1274_s22, %s1274_s22 }
 0x11a   :  { %p1802_p5 = scmp.ne.s32.totalorder %s1274_s22, %s1801_s23  ;;  %p1807_p7 = scmp.lt.s32.totalorder %s1801_s23, %s1801_s23 }
 0x11c   :  { %p1808_p8 = por %p1807_p7, %p1806_p6 }
 0x11e   :  { %p1809_p9 = pnand %p1808_p8, %p1802_p5 }
 0x120   :  { %1812 = shalt.err (!%p1809_p9)
}
 0x121   :  { %s1813_s26 = scalar_lea.hbm %s1983_s2, 384 }
 0x122   :  { %p1814_p10 = scmp.ne.s32.totalorder %s1983_s2, %s1813_s26  ;;  %p1817_p11 = scmp.lt.u32.totalorder %s1813_s26, %s1983_s2 }
 0x124   :  { %p1819_p12 = pnand %p1817_p11, %p1814_p10 }
 0x126   :  { %1822 = shalt.err (!%p1819_p12)
}
 0x127   :  { %s1877_s3 = smov 128   ;;  %s1878_s4 = smov 8  }
 0x128   :  { %1279 = dma.vmem_to_hbm [thread:$0]  %s1274_s22, 384, %s1983_s2, [#allocation7], %s1877_s3, %s1877_s3, %s1878_s4  }
 0x129   :  { %1873 = dma.done.wait [#allocation7], 384  }
 0x12a   :  { %1874 = vsyncadd [#allocation7], 4294966912 }
 0x12b   :  { %1283 = vsyncpa [#allocation7], 1 }
 0x12c   :  { %1284 = vsyncmov [#allocation3] }
 0x12f   :  { %s1285_s7 = vpop.sfrf %1284 }
 0x130   :  { %p1761_p13 = scmp.ne.s32.totalorder %s1285_s7, 0 }
 0x132   :  { %1289 = shalt.err (%p1761_p13)  }
 0x133   :  { %1291 = vsyncmov [#allocation3 + $0x1] }
 0x136   :  { %s1292_s8 = vpop.sfrf %1291 }
 0x137   :  { %p1762_p0 = scmp.ne.s32.totalorder %s1292_s8, 0 }
 0x139   :  { %1296 = shalt.err (%p1762_p0)  }
 0x13a   :  { %1298 = vsyncmov [#allocation3 + $0x2] }
 0x13d   :  { %s1299_s9 = vpop.sfrf %1298 }
 0x13e   :  { %p1763_p1 = scmp.ne.s32.totalorder %s1299_s9, 0 }
 0x140   :  { %1303 = shalt.err (%p1763_p1)  }
 0x141   :  { %1305 = vsyncmov [#allocation3 + $0x3] }
 0x144   :  { %s1306_s10 = vpop.sfrf %1305 }
 0x145   :  { %p1764_p2 = scmp.ne.s32.totalorder %s1306_s10, 0 }
 0x147   :  { %1310 = shalt.err (%p1764_p2)  }
 0x148   :  { %1312 = vsyncmov [#allocation3 + $0x4] }
 0x14b   :  { %s1313_s2 = vpop.sfrf %1312 }
 0x14c   :  { %p1765_p3 = scmp.ne.s32.totalorder %s1313_s2, 0 }
 0x14e   :  { %1317 = shalt.err (%p1765_p3)  }
 0x14f   :  { %1319 = vsyncmov [#allocation3 + $0x5] }
 0x152   :  { %s1320_s11 = vpop.sfrf %1319 }
 0x153   :  { %p1766_p4 = scmp.ne.s32.totalorder %s1320_s11, 0 }
 0x155   :  { %1324 = shalt.err (%p1766_p4)  }
 0x156   :  { %1326 = vsyncmov [#allocation3 + $0x6] }
 0x159   :  { %s1327_s12 = vpop.sfrf %1326 }
 0x15a   :  { %p1767_p5 = scmp.ne.s32.totalorder %s1327_s12, 0 }
 0x15c   :  { %1331 = shalt.err (%p1767_p5)  }
 0x15d   :  { %1333 = vsyncmov [#allocation3 + $0x7] }
 0x160   :  { %s1334_s13 = vpop.sfrf %1333 }
 0x161   :  { %p1768_p6 = scmp.ne.s32.totalorder %s1334_s13, 0 }
 0x163   :  { %1338 = shalt.err (%p1768_p6)  }
 0x164   :  { %1340 = vsyncmov [#allocation3 + $0x8] }
 0x167   :  { %s1341_s14 = vpop.sfrf %1340 }
 0x168   :  { %p1769_p7 = scmp.ne.s32.totalorder %s1341_s14, 0 }
 0x16a   :  { %1345 = shalt.err (%p1769_p7)  }
 0x16b   :  { %1347 = vsyncmov [#allocation3 + $0x9] }
 0x16e   :  { %s1348_s15 = vpop.sfrf %1347 }
 0x16f   :  { %p1770_p8 = scmp.ne.s32.totalorder %s1348_s15, 0 }
 0x171   :  { %1352 = shalt.err (%p1770_p8)  }
 0x172   :  { %1354 = vsyncmov [#allocation3 + $0xa] }
 0x175   :  { %s1355_s16 = vpop.sfrf %1354 }
 0x176   :  { %p1771_p9 = scmp.ne.s32.totalorder %s1355_s16, 0 }
 0x178   :  { %1359 = shalt.err (%p1771_p9)  }
 0x179   :  { %1361 = vsyncmov [#allocation3 + $0xb] }
 0x17c   :  { %s1362_s17 = vpop.sfrf %1361 }
 0x17d   :  { %p1772_p10 = scmp.ne.s32.totalorder %s1362_s17, 0 }
 0x17f   :  { %1366 = shalt.err (%p1772_p10)  }
 0x180   :  { %1368 = vsyncmov [#allocation3 + $0xc] }
 0x183   :  { %s1369_s0 = vpop.sfrf %1368 }
 0x184   :  { %p1773_p11 = scmp.ne.s32.totalorder %s1369_s0, 0 }
 0x186   :  { %1373 = shalt.err (%p1773_p11)  }
 0x187   :  { %1375 = vsyncmov [#allocation3 + $0xd] }
 0x18a   :  { %s1376_s18 = vpop.sfrf %1375 }
 0x18b   :  { %p1774_p12 = scmp.ne.s32.totalorder %s1376_s18, 0 }
 0x18d   :  { %1380 = shalt.err (%p1774_p12)  }
 0x18e   :  { %1382 = vsyncmov [#allocation3 + $0xe] }
 0x191   :  { %s1383_s19 = vpop.sfrf %1382 }
 0x192   :  { %p1775_p13 = scmp.ne.s32.totalorder %s1383_s19, 0 }
 0x194   :  { %1387 = shalt.err (%p1775_p13)  }
 0x195   :  { %1389 = vsyncmov [#allocation3 + $0xf] }
 0x198   :  { %s1390_s20 = vpop.sfrf %1389 }
 0x199   :  { %p1776_p0 = scmp.ne.s32.totalorder %s1390_s20, 0 }
 0x19b   :  { %1394 = shalt.err (%p1776_p0)  }
 0x19c   :  { %1396 = vsyncmov [#allocation3 + $0x10] }
 0x19f   :  { %s1397_s21 = vpop.sfrf %1396 }
 0x1a0   :  { %p1777_p1 = scmp.ne.s32.totalorder %s1397_s21, 0 }
 0x1a2   :  { %1401 = shalt.err (%p1777_p1)  }
 0x1a3   :  { %1403 = vsyncmov [#allocation3 + $0x11] }
 0x1a6   :  { %s1404_s1 = vpop.sfrf %1403 }
 0x1a7   :  { %p1778_p2 = scmp.ne.s32.totalorder %s1404_s1, 0 }
 0x1a9   :  { %1408 = shalt.err (%p1778_p2)  }
 0x1aa   :  { %1410 = vsyncmov [#allocation3 + $0x12] }
 0x1ad   :  { %s1411_s22 = vpop.sfrf %1410 }
 0x1ae   :  { %p1779_p3 = scmp.ne.s32.totalorder %s1411_s22, 0 }
 0x1b0   :  { %1415 = shalt.err (%p1779_p3)  }
 0x1b1   :  { %1417 = vsyncmov [#allocation3 + $0x13] }
 0x1b4   :  { %s1418_s23 = vpop.sfrf %1417 }
 0x1b5   :  { %p1780_p4 = scmp.ne.s32.totalorder %s1418_s23, 0 }
 0x1b7   :  { %1422 = shalt.err (%p1780_p4)  }
 0x1b8   :  { %1424 = vsyncmov [#allocation3 + $0x14] }
 0x1bb   :  { %s1425_s24 = vpop.sfrf %1424 }
 0x1bc   :  { %p1781_p5 = scmp.ne.s32.totalorder %s1425_s24, 0 }
 0x1be   :  { %1429 = shalt.err (%p1781_p5)  }
 0x1bf   :  { %1431 = vsyncmov [#allocation3 + $0x15] }
 0x1c2   :  { %s1432_s25 = vpop.sfrf %1431 }
 0x1c3   :  { %p1782_p6 = scmp.ne.s32.totalorder %s1432_s25, 0 }
 0x1c5   :  { %1436 = shalt.err (%p1782_p6)  }
 0x1c6   :  { %1438 = vsyncmov [#allocation3 + $0x16] }
 0x1c9   :  { %s1439_s26 = vpop.sfrf %1438 }
 0x1ca   :  { %p1783_p7 = scmp.ne.s32.totalorder %s1439_s26, 0 }
 0x1cc   :  { %1443 = shalt.err (%p1783_p7)  }
 0x1cd   :  { %1445 = vsyncmov [#allocation3 + $0x17] }
 0x1d0   :  { %s1446_s27 = vpop.sfrf %1445 }
 0x1d1   :  { %p1784_p8 = scmp.ne.s32.totalorder %s1446_s27, 0 }
 0x1d3   :  { %1450 = shalt.err (%p1784_p8)  }

</bundles_post_ra>
